<compile_context>
chip_gen: v6e
topology: v6e:2x2x1
jax: 0.10.0
libtpu: 0.0.40
codegen_flags: <defaults>
</compile_context>

<pallas_src>
import functools

import jax
import jax.numpy as jnp
from jax.experimental import pallas as pl
from jax.experimental.pallas import tpu as pltpu

_LANE = 128
_SUBLANE = 8


def _channel_attention_kernel(x_ref, w1t_ref, w2t_ref, o_ref,
                              sum_acc, max_acc, *, h, w, th):
    """One grid step processes an (bt, C, th, W) tile of x.

    sum_acc / max_acc: (bt, C) f32 VMEM scratch, persistent across the H
    ("arbitrary") grid axis.  o_ref: (bt, C) gate, written on the last H tile.
    """
    s = pl.program_id(1)
    ns = pl.num_programs(1)

    @pl.when(s == 0)
    def _init():
        sum_acc[...] = jnp.zeros_like(sum_acc)
        max_acc[...] = jnp.full_like(max_acc, -jnp.inf)

    def _accumulate(x_sum, x_max):
        # Reduce lanes (W) first, then rows: two 1-D reductions.
        # Sum accumulates in f32; max stays in the input dtype and only the
        # reduced (bt, C) result is upcast (no full-tile f32 copy for it).
        sum_acc[...] += jnp.sum(jnp.sum(x_sum.astype(jnp.float32), axis=3), axis=2)
        tile_max = jnp.max(jnp.max(x_max, axis=3), axis=2).astype(jnp.float32)
        max_acc[...] = jnp.maximum(max_acc[...], tile_max)

    if h % th != 0:
        # Only the trailing H tile is partial; only it pays for the masking.
        @pl.when(s < ns - 1)
        def _steady():
            x = x_ref[...]
            _accumulate(x, x)

        @pl.when(s == ns - 1)
        def _tail():
            x = x_ref[...]
            row = jax.lax.broadcasted_iota(jnp.int32, x.shape, 2)
            valid = (s * th + row) < h
            zero = jnp.zeros((), x.dtype)
            ninf = jnp.array(-jnp.inf, x.dtype)
            _accumulate(jnp.where(valid, x, zero), jnp.where(valid, x, ninf))
    else:
        x = x_ref[...]
        _accumulate(x, x)

    @pl.when(s == ns - 1)
    def _finalize():
        mean = sum_acc[...] * (1.0 / (h * w))                    # (bt, C)
        mx = max_acc[...]                                        # (bt, C)
        w1t = w1t_ref[...]                                       # (C, Cr)
        # fc1 + ReLU on both pooled vectors, batched over the bt rows.
        hid = (jnp.maximum(jnp.dot(mean, w1t, preferred_element_type=jnp.float32), 0.0)
               + jnp.maximum(jnp.dot(mx, w1t, preferred_element_type=jnp.float32), 0.0))
        # fc2 has no bias -> fc2(a) + fc2(b) == fc2(a + b): one matmul for both.
        gate = jnp.dot(hid, w2t_ref[...], preferred_element_type=jnp.float32)  # (bt, C)
        o_ref[...] = jax.nn.sigmoid(gate).astype(o_ref.dtype)


def _chip_vmem_bytes():
    try:
        info = pltpu.get_tpu_info()
        cap = int(getattr(info, "vmem_capacity_bytes", 0))
        if cap > 0:
            return cap
    except Exception:
        pass
    return 128 * 1024 * 1024


def _pick_bt(B, max_bt):
    """Largest divisor of B within budget; keep >= 2 batch grid steps when
    B >= 2 so the 'parallel' axis can be split across TensorCores (v7x)."""
    if B <= 1:
        return 1
    cap = max(1, min(max_bt, B // 2))
    for d in range(cap, 0, -1):
        if B % d == 0:
            return d
    return 1


def _choose_tiles(B, C, H, W, itemsize, block_budget_bytes):
    """Pick (bt, th).  W (the lane axis) is always taken in full; H is the
    in-kernel reduction ('arbitrary') grid axis.  VMEM planning uses the
    lane-padded W (the DMA itself only moves real data)."""
    w_vmem = -(-W // _LANE) * _LANE
    row_bytes = C * w_vmem * itemsize
    img_bytes = H * row_bytes
    if img_bytes <= block_budget_bytes:
        th = H                                   # whole image per step, no masking
        bt = _pick_bt(B, max(1, block_budget_bytes // img_bytes))
    else:
        bt = 1
        th = max(_SUBLANE, (block_budget_bytes // row_bytes) // _SUBLANE * _SUBLANE)
        th = min(th, H)
    return bt, th


def channel_attention_forward(x, fc1_weight, fc2_weight, *, block_budget_bytes=None):
    """x: (B, C, H, W). fc1_weight: (C//r, C, 1, 1). fc2_weight: (C, C//r, 1, 1).
    Returns the channel attention gate, shape (B, C, 1, 1), dtype of x.
    (Pass x as bf16 to halve HBM traffic; reductions/MLP run in f32 inside.)"""
    B, C, H, W = x.shape
    Cr = fc1_weight.shape[0]
    itemsize = jnp.dtype(x.dtype).itemsize

    vmem_cap = _chip_vmem_bytes()
    if block_budget_bytes is None:
        # ~16 MiB tiles on 128 MiB-VMEM chips (v5e/v6e), ~8 MiB on 64 MiB (v7x):
        # big enough that the ~0.35 us per-step overhead is small vs the DMA,
        # small enough to double-buffer with headroom.
        block_budget_bytes = (16 if vmem_cap >= 96 * 1024 * 1024 else 8) * 1024 * 1024

    bt, th = _choose_tiles(B, C, H, W, itemsize, block_budget_bytes)
    grid_b = B // bt            # bt always divides B

    # 1x1 convs on a (B, C, 1, 1) tensor are plain linears; pre-transpose so the
    # kernel runs row-major (bt, C) @ (C, Cr) and (bt, Cr) @ (Cr, C) matmuls.
    w1t = fc1_weight.reshape(Cr, C).astype(jnp.float32).T    # (C, Cr)
    w2t = fc2_weight.reshape(C, Cr).astype(jnp.float32).T    # (Cr, C)

    kernel = functools.partial(_channel_attention_kernel, h=H, w=W, th=th)

    # VMEM accounting (lane-padded): double-buffered input tiles plus an f32
    # temporary for the upcast / masked sum path, plus headroom.
    w_vmem = -(-W // _LANE) * _LANE
    th_vmem = -(-th // _SUBLANE) * _SUBLANE
    block_vmem = bt * C * th_vmem * w_vmem * itemsize
    block_vmem_f32 = bt * C * th_vmem * w_vmem * 4
    vmem_limit = int(min(int(vmem_cap * 0.85),
                         max(32 * 1024 * 1024,
                             2 * block_vmem + 2 * block_vmem_f32 + 16 * 1024 * 1024)))

    out = pl.pallas_call(
        kernel,
        out_shape=jax.ShapeDtypeStruct((grid_b, bt, C), x.dtype),
        grid_spec=pltpu.PrefetchScalarGridSpec(
            num_scalar_prefetch=0,
            grid=(grid_b, pl.cdiv(H, th)),
            in_specs=[
                pl.BlockSpec((bt, C, th, W), lambda b, s: (b, 0, s, 0)),  # x tile
                pl.BlockSpec((C, Cr), lambda b, s: (0, 0)),               # fc1.weight^T
                pl.BlockSpec((Cr, C), lambda b, s: (0, 0)),               # fc2.weight^T
            ],
            out_specs=pl.BlockSpec((None, bt, C), lambda b, s: (b, 0, 0)),
            scratch_shapes=[
                pltpu.VMEM((bt, C), jnp.float32),   # running spatial sum
                pltpu.VMEM((bt, C), jnp.float32),   # running spatial max
            ],
        ),
        compiler_params=pltpu.CompilerParams(
            dimension_semantics=("parallel", "arbitrary"),
            vmem_limit_bytes=vmem_limit,
        ),
        cost_estimate=pl.CostEstimate(
            flops=2 * B * C * H * W + 6 * B * C * Cr,
            transcendentals=B * C,
            bytes_accessed=(B * C * H * W * itemsize
                            + B * C * itemsize + 2 * C * Cr * 4),
        ),
    )(x, w1t, w2t)

    # (grid_b, bt, C) -> (B, C, 1, 1); tiny, free.
    return out.reshape(B, C, 1, 1)


def _reference(x, fc1_weight, fc2_weight):
    # Pure-JAX mirror of the PyTorch forward.
    B, C, H, W = x.shape
    Cr = fc1_weight.shape[0]
    w1 = fc1_weight.reshape(Cr, C).astype(jnp.float32)
    w2 = fc2_weight.reshape(C, Cr).astype(jnp.float32)
    xf = x.astype(jnp.float32).reshape(B, C, H * W)
    avg = xf.mean(-1)                                            # (B, C)
    mx = xf.max(-1)                                              # (B, C)
    avg_out = jax.nn.relu(avg @ w1.T) @ w2.T
    max_out = jax.nn.relu(mx @ w1.T) @ w2.T
    return jax.nn.sigmoid(avg_out + max_out)[:, :, None, None].astype(x.dtype)


if __name__ == "__main__":
    ratio = 16
    C = 32
    Cr = C // ratio

    key = jax.random.PRNGKey(0)
    kx1, kx2, k1, k2 = jax.random.split(key, 4)

    # PyTorch Conv2d weight shapes: fc1 (C//r, C, 1, 1), fc2 (C, C//r, 1, 1).
    fc1_w = jax.random.normal(k1, (Cr, C, 1, 1), dtype=jnp.float32) * 0.1
    fc2_w = jax.random.normal(k2, (C, Cr, 1, 1), dtype=jnp.float32) * 0.1

    # Case 1: default per-chip block budget -> whole image per grid step,
    # two "parallel" batch steps, no masking.
    x1 = jax.random.normal(kx1, (2, C, 16, 16), dtype=jnp.float32)
    out1 = jax.block_until_ready(channel_attention_forward(x1, fc1_w, fc2_w))
    ref1 = _reference(x1, fc1_w, fc2_w)
    assert out1.shape == (2, C, 1, 1)
    assert jnp.allclose(out1, ref1, atol=1e-5, rtol=1e-4)

    # Case 2: tiny VMEM budget + H not a multiple of the row tile -> exercises
    # the H-tiled reduction, the sum/max accumulators and the masked last tile.
    x2 = jax.random.normal(kx2, (3, C, 20, 20), dtype=jnp.float32)
    out2 = jax.block_until_ready(
        channel_attention_forward(x2, fc1_w, fc2_w, block_budget_bytes=16 * 1024))
    ref2 = _reference(x2, fc1_w, fc2_w)
    assert out2.shape == (3, C, 1, 1)
    assert jnp.allclose(out2, ref2, atol=1e-5, rtol=1e-4)

    print("KERNEL_OK")
</pallas_src>

<mosaic_0001>
module attributes {stable_mosaic.version = 11 : i64} {
  func.func @_channel_attention_kernel(%arg0: i32, %arg1: i32, %arg2: memref<1x32x16x16xf32, #tpu.memory_space<vmem>>, %arg3: memref<32x2xf32, #tpu.memory_space<vmem>>, %arg4: memref<2x32xf32, #tpu.memory_space<vmem>>, %arg5: memref<1x1x32xf32, #tpu.memory_space<vmem>>, %arg6: memref<1x32xf32, #tpu.memory_space<vmem>>, %arg7: memref<1x32xf32, #tpu.memory_space<vmem>>) attributes {dimension_semantics = [#tpu.dimension_semantics<parallel>, #tpu.dimension_semantics<arbitrary>], iteration_bounds = array<i64: 2, 1>, scalar_prefetch = 0 : i64, scratch_operands = 2 : i64, tpu.core_type = #tpu.core_type<tc>, window_params = [{transform_indices = @transform_0, window_bounds = array<i64: 1, 32, 16, 16>}, {pipeline_mode = #tpu.pipeline_mode<synchronous>, transform_indices = @transform_1, window_bounds = array<i64: 32, 2>}, {pipeline_mode = #tpu.pipeline_mode<synchronous>, transform_indices = @transform_2, window_bounds = array<i64: 2, 32>}, {transform_indices = @transform_3, window_bounds = array<i64: 1, 1, 32>}]} {
    %c0_i32 = arith.constant 0 : i32
    %0 = arith.cmpi eq, %arg1, %c0_i32 : i32
    %1 = arith.extui %0 : i1 to i32
    %c0_i32_0 = arith.constant 0 : i32
    %2 = arith.cmpi ne, %1, %c0_i32_0 : i32
    scf.if %2 {
      %cst_17 = arith.constant 0.000000e+00 : f32
      %17 = vector.broadcast %cst_17 : f32 to vector<1x32xf32>
      %c0_18 = arith.constant 0 : index
      %c0_19 = arith.constant 0 : index
      %18 = vector.load %arg6[%c0_18, %c0_19] : memref<1x32xf32, #tpu.memory_space<vmem>>, vector<1x32xf32>
      tpu.vector_store %arg6[%c0_18, %c0_19], %17 {strides = array<i32>} : memref<1x32xf32, #tpu.memory_space<vmem>>, vector<1x32xf32>,
      %cst_20 = arith.constant 0xFF800000 : f32
      %19 = vector.broadcast %cst_20 : f32 to vector<1x32xf32>
      %c0_21 = arith.constant 0 : index
      %c0_22 = arith.constant 0 : index
      %20 = vector.load %arg7[%c0_21, %c0_22] : memref<1x32xf32, #tpu.memory_space<vmem>>, vector<1x32xf32>
      tpu.vector_store %arg7[%c0_21, %c0_22], %19 {strides = array<i32>} : memref<1x32xf32, #tpu.memory_space<vmem>>, vector<1x32xf32>,
    } else {
    }
    %c0 = arith.constant 0 : index
    %c0_1 = arith.constant 0 : index
    %c0_2 = arith.constant 0 : index
    %c0_3 = arith.constant 0 : index
    %3 = vector.load %arg2[%c0, %c0_1, %c0_2, %c0_3] : memref<1x32x16x16xf32, #tpu.memory_space<vmem>>, vector<1x32x16x16xf32>
    %c0_4 = arith.constant 0 : index
    %c0_5 = arith.constant 0 : index
    %4 = vector.load %arg6[%c0_4, %c0_5] : memref<1x32xf32, #tpu.memory_space<vmem>>, vector<1x32xf32>
    %cst = arith.constant dense<0.000000e+00> : vector<1x32x16xf32>
    %5 = vector.multi_reduction <add>, %3, %cst [3] : vector<1x32x16x16xf32> to vector<1x32x16xf32>
    %cst_6 = arith.constant dense<0.000000e+00> : vector<1x32xf32>
    %6 = vector.multi_reduction <add>, %5, %cst_6 [2] : vector<1x32x16xf32> to vector<1x32xf32>
    %7 = arith.addf %4, %6 : vector<1x32xf32>
    %c0_7 = arith.constant 0 : index
    %c0_8 = arith.constant 0 : index
    %8 = vector.load %arg6[%c0_7, %c0_8] : memref<1x32xf32, #tpu.memory_space<vmem>>, vector<1x32xf32>
    tpu.vector_store %arg6[%c0_7, %c0_8], %7 {strides = array<i32>} : memref<1x32xf32, #tpu.memory_space<vmem>>, vector<1x32xf32>,
    %cst_9 = arith.constant dense<0xFF800000> : vector<1x32x16xf32>
    %9 = vector.multi_reduction <maximumf>, %3, %cst_9 [3] : vector<1x32x16x16xf32> to vector<1x32x16xf32>
    %cst_10 = arith.constant dense<0xFF800000> : vector<1x32xf32>
    %10 = vector.multi_reduction <maximumf>, %9, %cst_10 [2] : vector<1x32x16xf32> to vector<1x32xf32>
    %c0_11 = arith.constant 0 : index
    %c0_12 = arith.constant 0 : index
    %11 = vector.load %arg7[%c0_11, %c0_12] : memref<1x32xf32, #tpu.memory_space<vmem>>, vector<1x32xf32>
    %12 = arith.maximumf %11, %10 : vector<1x32xf32>
    %c0_13 = arith.constant 0 : index
    %c0_14 = arith.constant 0 : index
    %13 = vector.load %arg7[%c0_13, %c0_14] : memref<1x32xf32, #tpu.memory_space<vmem>>, vector<1x32xf32>
    tpu.vector_store %arg7[%c0_13, %c0_14], %12 {strides = array<i32>} : memref<1x32xf32, #tpu.memory_space<vmem>>, vector<1x32xf32>,
    %c0_i32_15 = arith.constant 0 : i32
    %14 = arith.cmpi eq, %arg1, %c0_i32_15 : i32
    %15 = arith.extui %14 : i1 to i32
    %c0_i32_16 = arith.constant 0 : i32
    %16 = arith.cmpi ne, %15, %c0_i32_16 : i32
    scf.if %16 {
      %c0_17 = arith.constant 0 : index
      %c0_18 = arith.constant 0 : index
      %17 = vector.load %arg6[%c0_17, %c0_18] : memref<1x32xf32, #tpu.memory_space<vmem>>, vector<1x32xf32>
      %cst_19 = arith.constant 3.906250e-03 : f32
      %18 = vector.broadcast %cst_19 : f32 to vector<1x32xf32>
      %19 = arith.mulf %17, %18 : vector<1x32xf32>
      %c0_20 = arith.constant 0 : index
      %c0_21 = arith.constant 0 : index
      %20 = vector.load %arg7[%c0_20, %c0_21] : memref<1x32xf32, #tpu.memory_space<vmem>>, vector<1x32xf32>
      %c0_22 = arith.constant 0 : index
      %c0_23 = arith.constant 0 : index
      %21 = vector.load %arg3[%c0_22, %c0_23] : memref<32x2xf32, #tpu.memory_space<vmem>>, vector<32x2xf32>
      %cst_24 = arith.constant dense<0.000000e+00> : vector<1x2xf32>
      %22 = tpu.matmul %19, %21, %cst_24 {dimension_numbers = #tpu.dot_dimension_numbers<[1], [0], [0], [1], [0, 0, 1, 1], [], []>} : vector<1x32xf32>, vector<32x2xf32>, vector<1x2xf32> -> vector<1x2xf32>
      %cst_25 = arith.constant 0.000000e+00 : f32
      %23 = vector.broadcast %cst_25 : f32 to vector<1x2xf32>
      %24 = arith.maximumf %22, %23 : vector<1x2xf32>
      %cst_26 = arith.constant dense<0.000000e+00> : vector<1x2xf32>
      %25 = tpu.matmul %20, %21, %cst_26 {dimension_numbers = #tpu.dot_dimension_numbers<[1], [0], [0], [1], [0, 0, 1, 1], [], []>} : vector<1x32xf32>, vector<32x2xf32>, vector<1x2xf32> -> vector<1x2xf32>
      %cst_27 = arith.constant 0.000000e+00 : f32
      %26 = vector.broadcast %cst_27 : f32 to vector<1x2xf32>
      %27 = arith.maximumf %25, %26 : vector<1x2xf32>
      %28 = arith.addf %24, %27 : vector<1x2xf32>
      %c0_28 = arith.constant 0 : index
      %c0_29 = arith.constant 0 : index
      %29 = vector.load %arg4[%c0_28, %c0_29] : memref<2x32xf32, #tpu.memory_space<vmem>>, vector<2x32xf32>
      %cst_30 = arith.constant dense<0.000000e+00> : vector<1x32xf32>
      %30 = tpu.matmul %28, %29, %cst_30 {dimension_numbers = #tpu.dot_dimension_numbers<[1], [0], [0], [1], [0, 0, 1, 1], [], []>} : vector<1x2xf32>, vector<2x32xf32>, vector<1x32xf32> -> vector<1x32xf32>
      %31 = arith.negf %30 : vector<1x32xf32>
      %32 = math.exp %31 : vector<1x32xf32>
      %cst_31 = arith.constant 1.000000e+00 : f32
      %33 = vector.broadcast %cst_31 : f32 to vector<1x32xf32>
      %34 = arith.addf %33, %32 : vector<1x32xf32>
      %35 = arith.divf %33, %34 : vector<1x32xf32>
      %c0_32 = arith.constant 0 : index
      %c0_33 = arith.constant 0 : index
      %c0_34 = arith.constant 0 : index
      %36 = vector.load %arg5[%c0_32, %c0_33, %c0_34] : memref<1x1x32xf32, #tpu.memory_space<vmem>>, vector<1x1x32xf32>
      %37 = vector.shape_cast %36 : vector<1x1x32xf32> to vector<1x32xf32>
      %38 = vector.shape_cast %35 : vector<1x32xf32> to vector<1x1x32xf32>
      tpu.vector_store %arg5[%c0_32, %c0_33, %c0_34], %38 {strides = array<i32>} : memref<1x1x32xf32, #tpu.memory_space<vmem>>, vector<1x1x32xf32>,
    } else {
    }
    return
  }
  func.func @transform_0(%arg0: i32, %arg1: i32) -> (i32, i32, i32, i32) {
    %c0_i32 = arith.constant 0 : i32
    %c0_i32_0 = arith.constant 0 : i32
    %c0_i32_1 = arith.constant 0 : i32
    return %arg0, %c0_i32, %arg1, %c0_i32_0 : i32, i32, i32, i32
  }
  func.func @transform_1(%arg0: i32, %arg1: i32) -> (i32, i32) {
    %c0_i32 = arith.constant 0 : i32
    %c0_i32_0 = arith.constant 0 : i32
    %c0_i32_1 = arith.constant 0 : i32
    return %c0_i32, %c0_i32_0 : i32, i32
  }
  func.func @transform_2(%arg0: i32, %arg1: i32) -> (i32, i32) {
    %c0_i32 = arith.constant 0 : i32
    %c0_i32_0 = arith.constant 0 : i32
    %c0_i32_1 = arith.constant 0 : i32
    return %c0_i32, %c0_i32_0 : i32, i32
  }
  func.func @transform_3(%arg0: i32, %arg1: i32) -> (i32, i32, i32) {
    %c0_i32 = arith.constant 0 : i32
    %c0_i32_0 = arith.constant 0 : i32
    %c0_i32_1 = arith.constant 0 : i32
    return %arg0, %c0_i32, %c0_i32_0 : i32, i32, i32
  }
}

</mosaic_0001>

<bundles_post_ra>
// kernel: tpu_custom_call.1
= control target key start
LH: loop header
LB: loop body
LE: loop exit
PB: predicated region body
PF: predicated region fallthrough
CT: control target
= control target key end

     0   :  { %8 = vsyncpa [#allocation5], 0  ;;  %s3902_s0 = inlined_call_operand.vmem [shape: f32[2,32,16,16], index: 0, kind: input, shape index: {}]   ;;  %s3903_s1 = inlined_call_operand.vmem [shape: f32[32,2], index: 1, kind: input, shape index: {}]   ;;  %s3904_s2 = inlined_call_operand.vmem [shape: f32[2,32], index: 2, kind: input, shape index: {}]   ;;  %s3905_s3 = inlined_call_operand.hbm [shape: f32[2,1,32], index: 3, kind: output, shape index: {}]  }
   0x1   :  { %10 = vsyncpa [#allocation5 + $0x1], 0  ;;  %s2767_s12 = smov 0   ;;  %s2769_s13 = smov 0  }
   0x2   :  { %s2771_s14 = smov 0   ;;  %s2773_s15 = smov 0  }
   0x3   :  { %s2775_s16 = smov 0   ;;  %s2777_s17 = smov 0  }
   0x4 LB: > { %s2542_s18 = sadd.s32 4294967295, %s2739_s17   ;;  %s2543_s19 = sadd.s32 4294967294, %s2739_s17   ;;  %s2739_s17 = sphi %s2777_s17, %s16_s17   ;;  %s2735_s16 = sphi %s2775_s16, %s3912_s16   ;;  %s2731_s15 = sphi %s2773_s15, %s3911_s15   ;;  %s2727_s14 = sphi %s2771_s14, %s3910_s14   ;;  %s2723_s13 = sphi %s2769_s13, %s3909_s13   ;;  %s2719_s12 = sphi %s2767_s12, %s3908_s12  }
   0x5   : > { %s28_s20 = sadd.s32 1, %s2735_s16  ;;  %s105_s21 = sadd.s32 1, %s2727_s14 }
   0x6   : > { %p30_p0 = scmp.ge.s32.totalorder %s28_s20, 2  ;;  %p115_p1 = scmp.ne.s32.totalorder %s2727_s14, %s2723_s13 }
   0x7   : > { %p116_p2 = scmp.eq.s32.totalorder %s2542_s18, 1  ;;  %p121_p3 = scmp.ne.s32.totalorder %s2723_s13, %s2719_s12 }
   0x8   : > { %s3914_s20 = smov (%p30_p0, %s28_s20), 0  ;;  %p122_p5 = scmp.eq.s32.totalorder %s2543_s19, 1 }
   0x9   : > { %p2807_p4 = por %p116_p2, %p115_p1  ;;  %s102_s23 = ssub.s32 %s2735_s16, %s3914_s20 }
   0xa   : > { %p2546_p6 = scmp.ge.s32.totalorder %s2739_s17, 1  ;;  %p103_p7 = scmp.eq.s32.totalorder %s102_s23, 0 }
   0xb   : > { %p2814_p8 = por %p122_p5, %p121_p3  ;;  %p159_p9 = scmp.lt.s32.totalorder %s2739_s17, 3 }
   0xc   : > { %s2820_s25 = scalar_select %p103_p7, %s2727_s14, %s105_s21  }
   0xd   : > { %p160_p10 = pnand %p2546_p6, %p159_p9 }
   0xe   : > { %p187_p11 = scmp.lt.s32.totalorder (!%p160_p10), %s2731_s15, 1  ;;  %s184_s21 = sand.u32 (!%p160_p10), 1, %s2723_s13  }
   0xf   : > { %163 = sbr.rel (%p160_p10) target bundleno = 1149 (0x47d), region = 32  ;;  %s2554_s23 = sshll.u32 (!%p160_p10), %s2731_s15, 4 }
  0x10   : > { %s2461_s4 = scalar_lea.sflag (!%p160_p10), [#allocation5], %s184_s21  ;;  %s2746_s6 = smov (!%p160_p10), [#allocation4]  }
  0x11   : > { %s2667_s7 = sshll.u32 (!%p160_p10), %s2746_s6, 4  ;;  %s2668_s7 = int_to_ptr.vmem [resolvable:$false] %s2667_s7 }
  0x14   : > { %s188_s26 = scalar_select %p187_p11, %s2731_s15, 1  ;;  %vm268_vm0 = vcmask 130048   ;;  %vm536_vm1 = vcmask 130112   ;;  %vm817_vm2 = vcmask 1041409   ;;  %vm819_vm3 = vcmask 1042434  }
  0x15   : > { %vm821_vm4 = vcmask 1043459   ;;  %vm823_vm5 = vcmask 1044484   ;;  %vm825_vm6 = vcmask 1045509   ;;  %vm827_vm7 = vcmask 1046534   ;;  %s2669_s15 = scalar_lea.vmem %s2668_s7, 32 }
  0x16   : > { %s2557_s27 = sshll.u32 %s188_s26, 9  ;;  %vm829_vm8 = vcmask 1047559   ;;  %vm200_vm9 = vcmask 253952   ;;  %vm2744_vm10 = vmmov 0   ;;  %vm1222_vm11 = vcmask 195712   ;;  %s185_s26 = scalar_lea.vmem [#allocation4], %s184_s21 }
  0x17   : > { %s2827_s30 = scalar_lea.vmem %s3902_s0, %s2557_s27  ;;  %vm1229_vm12 = vcmask 261312   ;;  %vm2224_vm13 = vcmask 261120   ;;  %vm2379_vm14 = vcmask 1041408   ;;  %vm2375_vm15 = vcmask 15360   ;;  %s2473_s27 = sshll.u32 %s185_s26, 4  ;;  %s2474_s27 = int_to_ptr.vmem [resolvable:$true] %s2473_s27 }
  0x18   : > { %v2830_v0 = vld [vmem:[%s2827_s30 + $0x10] sm:$0xff]  ;;  %v2833_v1 = vld [vmem:[%s2827_s30] sm:$0xff]  ;;  %v2836_v2 = vld [vmem:[%s2827_s30 + $0x18] sm:$0xff]  ;;  %s2663_s5 = scalar_lea.vmem %s2474_s27, 16  ;;  %p2670_p1 = scmp.lt.s32.totalorder %s2474_s27, %s2668_s7 }
  0x19   : > { %v275_v3 = vsel %vm268_vm0, %v2830_v0, 0.0  ;;  %v269_v4 = vsel %vm268_vm0, %v2833_v1, 0.0  ;;  %v2843_v5 = vld [vmem:[%s2827_s30 + $0x8] sm:$0xff]  ;;  %v278_v6 = vsel %vm268_vm0, %v2836_v2, 0.0  ;;  %v2853_v9 = vld [vmem:[%s2827_s30 + $0x80] sm:$0xff]  ;;  %v2860_v12 = vld [vmem:[%s2827_s30 + $0x98] sm:$0xff]  ;;  %p2664_p12 = scmp.ne.s32.totalorder %s2474_s27, %s2663_s5  ;;  %p2671_p2 = scmp.lt.s32.totalorder %s2669_s15, %s2663_s5 }
  0x1a   : > { %276 = vadd.xlane.f32.xlu1 %v275_v3  ;;  %270 = vadd.xlane.f32.xlu0 %v269_v4  ;;  %v272_v7 = vsel %vm268_vm0, %v2843_v5, 0.0  ;;  %v2850_v8 = vld [vmem:[%s2827_s30 + $0x88] sm:$0xff]  ;;  %v317_v11 = vsel %vm268_vm0, %v2853_v9, 0.0  ;;  %v2863_v13 = vld [vmem:[%s2827_s30 + $0x90] sm:$0xff]  ;;  %v326_v14 = vsel %vm268_vm0, %v2860_v12, 0.0  ;;  %v2873_v17 = vld [vmem:[%s2827_s30 + $0x20] sm:$0xff] }
  0x1b   : > { %v320_v10 = vsel %vm268_vm0, %v2850_v8, 0.0  ;;  %v323_v15 = vsel %vm268_vm0, %v2863_v13, 0.0  ;;  %v2870_v16 = vld [vmem:[%s2827_s30 + $0x28] sm:$0xff]  ;;  %v281_v19 = vsel %vm268_vm0, %v2873_v17, 0.0  ;;  %v2883_v21 = vld [vmem:[%s2827_s30 + $0xa0] sm:$0xff]  ;;  %v2900_v28 = vld [vmem:[%s2827_s30 + $0x118] sm:$0xff]  ;;  %p2665_p13 = pnand %p2664_p12, %p2807_p4  ;;  %p2672_p3 = por %p2671_p2, %p2670_p1 }
  0x1c   : > { %v284_v18 = vsel %vm268_vm0, %v2870_v16, 0.0  ;;  %v2880_v20 = vld [vmem:[%s2827_s30 + $0xa8] sm:$0xff]  ;;  %v329_v23 = vsel %vm268_vm0, %v2883_v21, 0.0  ;;  %v2893_v25 = vld [vmem:[%s2827_s30 + $0x100] sm:$0xff]  ;;  %v2903_v29 = vld [vmem:[%s2827_s30 + $0x110] sm:$0xff]  ;;  %v374_v30 = vsel %vm268_vm0, %v2900_v28, 0.0 }
  0x1d   : > { %v332_v22 = vsel %vm268_vm0, %v2880_v20, 0.0  ;;  %v2890_v24 = vld [vmem:[%s2827_s30 + $0x108] sm:$0xff]  ;;  %v365_v27 = vsel %vm268_vm0, %v2893_v25, 0.0  ;;  %v371_v31 = vsel %vm268_vm0, %v2903_v29, 0.0  ;;  %v2910_v32 = vld [vmem:[%s2827_s30 + $0x38] sm:$0xff]  ;;  %v2913_v33 = vld [vmem:[%s2827_s30 + $0x30] sm:$0xff]  ;;  %p2666_p0 = pneg %p2665_p13 }
  0x1e   : > { %279 = vadd.xlane.f32.xlu1 %v278_v6  ;;  %273 = vadd.xlane.f32.xlu0 %v272_v7  ;;  %v368_v26 = vsel %vm268_vm0, %v2890_v24, 0.0  ;;  %v290_v34 = vsel %vm268_vm0, %v2910_v32, 0.0  ;;  %v287_v35 = vsel %vm268_vm0, %v2913_v33, 0.0  ;;  %v2920_v36 = vld [vmem:[%s2827_s30 + $0xb8] sm:$0xff]  ;;  %v2923_v37 = vld [vmem:[%s2827_s30 + $0xb0] sm:$0xff]  ;;  %v2930_v40 = vld [vmem:[%s2827_s30 + $0x128] sm:$0xff] }
  0x1f   : > { %v338_v38 = vsel %vm268_vm0, %v2920_v36, 0.0  ;;  %v335_v39 = vsel %vm268_vm0, %v2923_v37, 0.0  ;;  %v2933_v41 = vld [vmem:[%s2827_s30 + $0x120] sm:$0xff]  ;;  %v380_v42 = vsel %vm268_vm0, %v2930_v40, 0.0  ;;  %v2940_v44 = vld [vmem:[%s2827_s30 + $0x188] sm:$0xff]  ;;  %v2950_v48 = vld [vmem:[%s2827_s30 + $0x198] sm:$0xff]  ;;  %p2673_p5 = pnand %p2672_p3, %p2666_p0 }
  0x20   : > { %v377_v43 = vsel %vm268_vm0, %v2933_v41, 0.0  ;;  %v2943_v45 = vld [vmem:[%s2827_s30 + $0x180] sm:$0xff]  ;;  %v416_v46 = vsel %vm268_vm0, %v2940_v44, 0.0  ;;  %v2953_v49 = vld [vmem:[%s2827_s30 + $0x190] sm:$0xff]  ;;  %v422_v50 = vsel %vm268_vm0, %v2950_v48, 0.0  ;;  %v1252_v52 = vsel %vm268_vm0, %v2843_v5, -inf }
  0x21   : > { %v413_v47 = vsel %vm268_vm0, %v2943_v45, 0.0  ;;  %v419_v51 = vsel %vm268_vm0, %v2953_v49, 0.0  ;;  %v1249_v53 = vsel %vm268_vm0, %v2833_v1, -inf  ;;  %v1258_v54 = vsel %vm268_vm0, %v2836_v2, -inf  ;;  %v2976_v60 = vld [vmem:[%s2827_s30 + $0x48] sm:$0xff]  ;;  %v2979_v61 = vld [vmem:[%s2827_s30 + $0x40] sm:$0xff] }
  0x22   : > { %321 = vadd.xlane.f32.xlu1 %v320_v10  ;;  %318 = vadd.xlane.f32.xlu0 %v317_v11  ;;  %v1255_v55 = vsel %vm268_vm0, %v2830_v0, -inf  ;;  %v1300_v56 = vsel %vm268_vm0, %v2850_v8, -inf  ;;  %v1297_v57 = vsel %vm268_vm0, %v2853_v9, -inf  ;;  %v1306_v58 = vsel %vm268_vm0, %v2860_v12, -inf  ;;  %v2986_v0 = vld [vmem:[%s2827_s30 + $0xc8] sm:$0xff]  ;;  %v2989_v1 = vld [vmem:[%s2827_s30 + $0xc0] sm:$0xff] }
  0x23   : > { %v1303_v59 = vsel %vm268_vm0, %v2863_v13, -inf  ;;  %v296_v62 = vsel %vm268_vm0, %v2976_v60, 0.0  ;;  %v293_v63 = vsel %vm268_vm0, %v2979_v61, 0.0  ;;  %v344_v2 = vsel %vm268_vm0, %v2986_v0, 0.0  ;;  %v2996_v4 = vld [vmem:[%s2827_s30 + $0x138] sm:$0xff]  ;;  %v2999_v5 = vld [vmem:[%s2827_s30 + $0x130] sm:$0xff] }
  0x24   : > { %v341_v3 = vsel %vm268_vm0, %v2989_v1, 0.0  ;;  %v386_v6 = vsel %vm268_vm0, %v2996_v4, 0.0  ;;  %v383_v7 = vsel %vm268_vm0, %v2999_v5, 0.0  ;;  %v3006_v8 = vld [vmem:[%s2827_s30 + $0x1a8] sm:$0xff]  ;;  %v3009_v9 = vld [vmem:[%s2827_s30 + $0x1a0] sm:$0xff]  ;;  %v1264_v12 = vsel %vm268_vm0, %v2870_v16, -inf }
  0x25   : > { %v428_v10 = vsel %vm268_vm0, %v3006_v8, 0.0  ;;  %v425_v11 = vsel %vm268_vm0, %v3009_v9, 0.0  ;;  %v1261_v13 = vsel %vm268_vm0, %v2873_v17, -inf  ;;  %v1345_v16 = vsel %vm268_vm0, %v2893_v25, -inf  ;;  %v3045_v25 = vld [vmem:[%s2827_s30 + $0xd0] sm:$0xff] }
  0x26   : > { %327 = vadd.xlane.f32.xlu1 %v326_v14  ;;  %324 = vadd.xlane.f32.xlu0 %v323_v15  ;;  %v1312_v14 = vsel %vm268_vm0, %v2880_v20, -inf  ;;  %v1309_v15 = vsel %vm268_vm0, %v2883_v21, -inf  ;;  %v1354_v17 = vsel %vm268_vm0, %v2900_v28, -inf  ;;  %v3032_v20 = vld [vmem:[%s2827_s30 + $0x58] sm:$0xff]  ;;  %v3035_v21 = vld [vmem:[%s2827_s30 + $0x50] sm:$0xff]  ;;  %v3052_v28 = vld [vmem:[%s2827_s30 + $0x148] sm:$0xff] }
  0x2a   : > { %285 = vadd.xlane.f32.xlu1 %v284_v18  ;;  %282 = vadd.xlane.f32.xlu0 %v281_v19  ;;  %v1348_v18 = vsel %vm268_vm0, %v2890_v24, -inf  ;;  %v1351_v19 = vsel %vm268_vm0, %v2903_v29, -inf  ;;  %v3042_v24 = vld [vmem:[%s2827_s30 + $0xd8] sm:$0xff]  ;;  %v3055_v29 = vld [vmem:[%s2827_s30 + $0x140] sm:$0xff] }
  0x2e   : > { %333 = vadd.xlane.f32.xlu1 %v332_v22  ;;  %330 = vadd.xlane.f32.xlu0 %v329_v23  ;;  %v302_v22 = vsel %vm268_vm0, %v3032_v20, 0.0  ;;  %v299_v23 = vsel %vm268_vm0, %v3035_v21, 0.0 }
  0x32   : > { %369 = vadd.xlane.f32.xlu1 %v368_v26  ;;  %366 = vadd.xlane.f32.xlu0 %v365_v27  ;;  %v350_v26 = vsel %vm268_vm0, %v3042_v24, 0.0  ;;  %v347_v27 = vsel %vm268_vm0, %v3045_v25, 0.0 }
  0x36   : > { %375 = vadd.xlane.f32.xlu1 %v374_v30  ;;  %372 = vadd.xlane.f32.xlu0 %v371_v31  ;;  %v392_v30 = vsel %vm268_vm0, %v3052_v28, 0.0  ;;  %v389_v31 = vsel %vm268_vm0, %v3055_v29, 0.0 }
  0x3a   : > { %291 = vadd.xlane.f32.xlu1 %v290_v34  ;;  %288 = vadd.xlane.f32.xlu0 %v287_v35  ;;  %v3062_v34 = vld [vmem:[%s2827_s30 + $0x1b8] sm:$0xff]  ;;  %v3065_v35 = vld [vmem:[%s2827_s30 + $0x1b0] sm:$0xff] }
  0x3e   : > { %339 = vadd.xlane.f32.xlu1 %v338_v38  ;;  %336 = vadd.xlane.f32.xlu0 %v335_v39  ;;  %v434_v38 = vsel %vm268_vm0, %v3062_v34, 0.0  ;;  %v431_v39 = vsel %vm268_vm0, %v3065_v35, 0.0 }
  0x42   : > { %381 = vadd.xlane.f32.xlu1 %v380_v42  ;;  %378 = vadd.xlane.f32.xlu0 %v377_v43  ;;  %v1270_v42 = vsel %vm268_vm0, %v2910_v32, -inf  ;;  %v1267_v43 = vsel %vm268_vm0, %v2913_v33, -inf  ;;  %v1357_v32 = vsel %vm268_vm0, %v2933_v41, -inf  ;;  %v1396_v33 = vsel %vm268_vm0, %v2940_v44, -inf  ;;  %v3092_v41 = vld [vmem:[%s2827_s30 + $0x68] sm:$0xff] }
  0x46   : > { %417 = vadd.xlane.f32.xlu1 %v416_v46  ;;  %414 = vadd.xlane.f32.xlu0 %v413_v47  ;;  %v1318_v46 = vsel %vm268_vm0, %v2920_v36, -inf  ;;  %v1315_v47 = vsel %vm268_vm0, %v2923_v37, -inf  ;;  %v1393_v36 = vsel %vm268_vm0, %v2943_v45, -inf  ;;  %v525_v37 = vlaneseq }
  0x47   : > { %v308_v45 = vsel %vm268_vm0, %v3092_v41, 0.0 }
  0x48   : > { %v3097_v44 = vand.u32 127, %v525_v37 }
  0x4a   : > { %423 = vadd.xlane.f32.xlu1 %v422_v50  ;;  %420 = vadd.xlane.f32.xlu0 %v419_v51  ;;  %v1360_v50 = vsel %vm268_vm0, %v2930_v40, -inf  ;;  %v1402_v51 = vsel %vm268_vm0, %v2950_v48, -inf  ;;  %v1399_v40 = vsel %vm268_vm0, %v2953_v49, -inf  ;;  %v3103_v48 = vshrl.u32 %v525_v37, 7  ;;  %v3109_v49 = vld [vmem:[%s2827_s30 + $0xe0] sm:$0xff] }
  0x4e   : > { %1253 = vmax.xlane.f32.xlu1 %v1252_v52  ;;  %1250 = vmax.xlane.f32.xlu0 %v1249_v53  ;;  %v3095_v52 = vld [vmem:[%s2827_s30 + $0x60] sm:$0xff] }
  0x4f   : > { %v305_v53 = vsel %vm268_vm0, %v3095_v52, 0.0 }
  0x52   : > { %1259 = vmax.xlane.f32.xlu1 %v1258_v54  ;;  %1256 = vmax.xlane.f32.xlu0 %v1255_v55  ;;  %v3106_v54 = vld [vmem:[%s2827_s30 + $0xe8] sm:$0xff]  ;;  %v531_v55 = vadd.s32 4294967288, %v3097_v44 }
  0x56   : > { %1301 = vmax.xlane.f32.xlu1 %v1300_v56  ;;  %1298 = vmax.xlane.f32.xlu0 %v1297_v57 }
  0x5a   : > { %1307 = vmax.xlane.f32.xlu1 %v1306_v58  ;;  %1304 = vmax.xlane.f32.xlu0 %v1303_v59  ;;  %v356_v58 = vsel %vm268_vm0, %v3106_v54, 0.0  ;;  %v353_v59 = vsel %vm268_vm0, %v3109_v49, 0.0 }
  0x5e   : > { %297 = vadd.xlane.f32.xlu1 %v296_v62  ;;  %294 = vadd.xlane.f32.xlu0 %v293_v63  ;;  %v3118_v62 = vsub.s32 %v3097_v44, %v3103_v48  ;;  %v3121_v63 = vsub.s32 %v531_v55, %v3103_v48 }
  0x62   : > { %345 = vadd.xlane.f32.xlu1 %v344_v2  ;;  %342 = vadd.xlane.f32.xlu0 %v341_v3  ;;  %v3124_v2 = vld [vmem:[%s2827_s30 + $0x158] sm:$0xff]  ;;  %v3127_v3 = vld [vmem:[%s2827_s30 + $0x150] sm:$0xff] }
  0x66   : > { %387 = vadd.xlane.f32.xlu1 %v386_v6  ;;  %384 = vadd.xlane.f32.xlu0 %v383_v7 }
  0x6a   : > { %429 = vadd.xlane.f32.xlu1 %v428_v10  ;;  %426 = vadd.xlane.f32.xlu0 %v425_v11  ;;  %v398_v10 = vsel %vm268_vm0, %v3124_v2, 0.0  ;;  %v395_v11 = vsel %vm268_vm0, %v3127_v3, 0.0 }
  0x6e   : > { %1265 = vmax.xlane.f32.xlu1 %v1264_v12  ;;  %1262 = vmax.xlane.f32.xlu0 %v1261_v13 }
  0x72   : > { %1313 = vmax.xlane.f32.xlu1 %v1312_v14  ;;  %1310 = vmax.xlane.f32.xlu0 %v1309_v15 }
  0x76   : > { %1349 = vmax.xlane.f32.xlu1 %v1348_v18  ;;  %1346 = vmax.xlane.f32.xlu0 %v1345_v16  ;;  %v3138_v18 = vld [vmem:[%s2827_s30 + $0x1c8] sm:$0xff]  ;;  %v3141_v16 = vld [vmem:[%s2827_s30 + $0x1c0] sm:$0xff] }
  0x7a   : > { %1355 = vmax.xlane.f32.xlu1 %v1354_v17  ;;  %1352 = vmax.xlane.f32.xlu0 %v1351_v19 }
  0x7e   : > { %303 = vadd.xlane.f32.xlu1 %v302_v22  ;;  %300 = vadd.xlane.f32.xlu0 %v299_v23 }
  0x82   : > { %351 = vadd.xlane.f32.xlu1 %v350_v26  ;;  %348 = vadd.xlane.f32.xlu0 %v347_v27  ;;  %v440_v27 = vsel %vm268_vm0, %v3138_v18, 0.0 }
  0x86   : > { %393 = vadd.xlane.f32.xlu1 %v392_v30  ;;  %390 = vadd.xlane.f32.xlu0 %v389_v31  ;;  %v437_v30 = vsel %vm268_vm0, %v3141_v16, 0.0 }
  0x8a   : > { %435 = vadd.xlane.f32.xlu1 %v434_v38  ;;  %432 = vadd.xlane.f32.xlu0 %v431_v39 }
  0x8e   : > { %1271 = vmax.xlane.f32.xlu1 %v1270_v42  ;;  %1268 = vmax.xlane.f32.xlu0 %v1267_v43 }
  0x92   : > { %1319 = vmax.xlane.f32.xlu1 %v1318_v46  ;;  %1316 = vmax.xlane.f32.xlu0 %v1315_v47  ;;  %v1276_v46 = vsel %vm268_vm0, %v2976_v60, -inf  ;;  %v1273_v47 = vsel %vm268_vm0, %v2979_v61, -inf  ;;  %v1321_v60 = vsel %vm268_vm0, %v2989_v1, -inf  ;;  %v1363_v1 = vsel %vm268_vm0, %v2999_v5, -inf }
  0x96   : > { %1361 = vmax.xlane.f32.xlu1 %v1360_v50  ;;  %1358 = vmax.xlane.f32.xlu0 %v1357_v32 }
  0x9a   : > { %1397 = vmax.xlane.f32.xlu1 %v1396_v33  ;;  %1394 = vmax.xlane.f32.xlu0 %v1393_v36 }
  0x9e   : > { %1403 = vmax.xlane.f32.xlu1 %v1402_v51  ;;  %1400 = vmax.xlane.f32.xlu0 %v1399_v40  ;;  %v1324_v40 = vsel %vm268_vm0, %v2986_v0, -inf  ;;  %v1366_v0 = vsel %vm268_vm0, %v2996_v4, -inf  ;;  %v1405_v4 = vsel %vm268_vm0, %v3009_v9, -inf }
  0xa2   : > { %309 = vadd.xlane.f32.xlu1 %v308_v45  ;;  %306 = vadd.xlane.f32.xlu0 %v305_v53 }
  0xa3   : > { %v277_v56 = vpop.xlane.xlu1 %276  ;;  %v271_v57 = vpop.xlane.xlu0 %270 }
  0xa4   : > { %v541_v12 = vrot.slane %v277_v56, %v3118_v62  ;;  %v530_v13 = vrot.slane %v271_v57, %v3118_v62 }
  0xa6   : > { %357 = vadd.xlane.f32.xlu1 %v356_v58  ;;  %354 = vadd.xlane.f32.xlu0 %v353_v59 }
  0xa7   : > { %v280_v6 = vpop.xlane.xlu1 %279  ;;  %v274_v7 = vpop.xlane.xlu0 %273 }
  0xa8   : > { %v545_v14 = vrot.slane %v280_v6, %v3121_v63  ;;  %v535_v15 = vrot.slane %v274_v7, %v3121_v63 }
  0xaa   : > { %v546_v17 = vsel %vm536_vm1, %v545_v14, %v541_v12  ;;  %v537_v19 = vsel %vm536_vm1, %v535_v15, %v530_v13  ;;  %399 = vadd.xlane.f32.xlu1 %v398_v10  ;;  %396 = vadd.xlane.f32.xlu0 %v395_v11  ;;  %v1408_v12 = vsel %vm268_vm0, %v3006_v8, -inf  ;;  %v3184_v14 = vld [vmem:[%s2827_s30 + $0x78] sm:$0xff]  ;;  %v3187_v15 = vld [vmem:[%s2827_s30 + $0x70] sm:$0xff] }
  0xab   : > { %v818_v22 = vsel %vm817_vm2, %v546_v17, %v537_v19  ;;  %v322_v23 = vpop.xlane.xlu1 %321  ;;  %v319_v26 = vpop.xlane.xlu0 %318  ;;  %v314_v8 = vsel %vm268_vm0, %v3184_v14, 0.0  ;;  %v311_v9 = vsel %vm268_vm0, %v3187_v15, 0.0 }
  0xac   : > { %v608_v31 = vrot.slane %v322_v23, %v3121_v63  ;;  %v604_v38 = vrot.slane %v319_v26, %v3118_v62 }
  0xae   : > { %v609_v39 = vsel %vm536_vm1, %v608_v31, %v604_v38  ;;  %441 = vadd.xlane.f32.xlu1 %v440_v27  ;;  %438 = vadd.xlane.f32.xlu0 %v437_v30  ;;  %v3197_v27 = vld [vmem:[%s2827_s30 + $0xf8] sm:$0xff]  ;;  %v3200_v30 = vld [vmem:[%s2827_s30 + $0xf0] sm:$0xff] }
  0xaf   : > { %v328_v42 = vpop.xlane.xlu1 %327  ;;  %v325_v43 = vpop.xlane.xlu0 %324 }
  0xb0   : > { %v617_v50 = vrot.slane %v328_v42, %v3121_v63  ;;  %v613_v32 = vrot.slane %v325_v43, %v3118_v62  ;;  %v362_v43 = vsel %vm268_vm0, %v3197_v27, 0.0 }
  0xb2   : > { %v618_v33 = vsel %vm536_vm1, %v617_v50, %v613_v32  ;;  %1277 = vmax.xlane.f32.xlu1 %v1276_v46  ;;  %1274 = vmax.xlane.f32.xlu0 %v1273_v47  ;;  %v359_v46 = vsel %vm268_vm0, %v3200_v30, 0.0  ;;  %v3211_v32 = vld [vmem:[%s2827_s30 + $0x168] sm:$0xff] }
  0xb3   : > { %v831_v36 = vsel %vm817_vm2, %v618_v33, %v609_v39  ;;  %v286_v37 = vpop.xlane.xlu1 %285  ;;  %v283_v51 = vpop.xlane.xlu0 %282  ;;  %v3214_v33 = vld [vmem:[%s2827_s30 + $0x160] sm:$0xff] }
  0xb4   : > { %v554_v61 = vrot.slane %v286_v37, %v3121_v63  ;;  %v550_v45 = vrot.slane %v283_v51, %v3118_v62 }
  0xb6   : > { %v555_v53 = vsel %vm536_vm1, %v554_v61, %v550_v45  ;;  %1325 = vmax.xlane.f32.xlu1 %v1324_v40  ;;  %1322 = vmax.xlane.f32.xlu0 %v1321_v60  ;;  %v404_v60 = vsel %vm268_vm0, %v3211_v32, 0.0  ;;  %v401_v61 = vsel %vm268_vm0, %v3214_v33, 0.0 }
  0xb7   : > { %v820_v55 = vsel %vm819_vm3, %v555_v53, %v818_v22  ;;  %v334_v56 = vpop.xlane.xlu1 %333  ;;  %v331_v57 = vpop.xlane.xlu0 %330 }
  0xb8   : > { %v626_v58 = vrot.slane %v334_v56, %v3121_v63  ;;  %v622_v59 = vrot.slane %v331_v57, %v3118_v62  ;;  %v3227_v56 = vld [vmem:[%s2827_s30 + $0x1d8] sm:$0xff]  ;;  %v3230_v57 = vld [vmem:[%s2827_s30 + $0x1d0] sm:$0xff] }
  0xba   : > { %v627_v6 = vsel %vm536_vm1, %v626_v58, %v622_v59  ;;  %1367 = vmax.xlane.f32.xlu1 %v1366_v0  ;;  %1364 = vmax.xlane.f32.xlu0 %v1363_v1  ;;  %v446_v59 = vsel %vm268_vm0, %v3227_v56, 0.0 }
  0xbb   : > { %v832_v7 = vsel %vm819_vm3, %v627_v6, %v831_v36  ;;  %v370_v10 = vpop.xlane.xlu1 %369  ;;  %v367_v11 = vpop.xlane.xlu0 %366  ;;  %v443_v6 = vsel %vm268_vm0, %v3230_v57, 0.0 }
  0xbc   : > { %v680_v5 = vrot.slane %v370_v10, %v3121_v63  ;;  %v676_v13 = vrot.slane %v367_v11, %v3118_v62 }
  0xbe   : > { %v681_v17 = vsel %vm536_vm1, %v680_v5, %v676_v13  ;;  %1409 = vmax.xlane.f32.xlu1 %v1408_v12  ;;  %1406 = vmax.xlane.f32.xlu0 %v1405_v4  ;;  %v1282_v13 = vsel %vm268_vm0, %v3032_v20, -inf }
  0xbf   : > { %v376_v19 = vpop.xlane.xlu1 %375  ;;  %v373_v22 = vpop.xlane.xlu0 %372 }
  0xc0   : > { %v689_v23 = vrot.slane %v376_v19, %v3121_v63  ;;  %v685_v26 = vrot.slane %v373_v22, %v3118_v62 }
  0xc2   : > { %v690_v31 = vsel %vm536_vm1, %v689_v23, %v685_v26  ;;  %315 = vadd.xlane.f32.xlu1 %v314_v8  ;;  %312 = vadd.xlane.f32.xlu0 %v311_v9  ;;  %v1330_v26 = vsel %vm268_vm0, %v3042_v24, -inf  ;;  %v1372_v24 = vsel %vm268_vm0, %v3052_v28, -inf  ;;  %v1411_v28 = vsel %vm268_vm0, %v3065_v35, -inf }
  0xc3   : > { %v838_v38 = vsel %vm817_vm2, %v690_v31, %v681_v17  ;;  %v292_v39 = vpop.xlane.xlu1 %291  ;;  %v289_v42 = vpop.xlane.xlu0 %288  ;;  %v1279_v17 = vsel %vm268_vm0, %v3035_v21, -inf  ;;  %v1327_v31 = vsel %vm268_vm0, %v3045_v25, -inf  ;;  %v1369_v25 = vsel %vm268_vm0, %v3055_v29, -inf }
  0xc4   : > { %v563_v47 = vrot.slane %v292_v39, %v3121_v63  ;;  %v559_v50 = vrot.slane %v289_v42, %v3118_v62 }
  0xc6   : > { %v564_v36 = vsel %vm536_vm1, %v563_v47, %v559_v50  ;;  %363 = vadd.xlane.f32.xlu1 %v362_v43  ;;  %360 = vadd.xlane.f32.xlu0 %v359_v46 }
  0xc7   : > { %v3218_v37 = vsel %vm821_vm4, %v564_v36, %v820_v55  ;;  %v340_v51 = vpop.xlane.xlu1 %339  ;;  %v337_v40 = vpop.xlane.xlu0 %336 }
  0xc8   : > { %v635_v45 = vrot.slane %v340_v51, %v3121_v63  ;;  %v631_v53 = vrot.slane %v337_v40, %v3118_v62  ;;  %v1414_v40 = vsel %vm268_vm0, %v3062_v34, -inf }
  0xca   : > { %v636_v0 = vsel %vm536_vm1, %v635_v45, %v631_v53  ;;  %405 = vadd.xlane.f32.xlu1 %v404_v60  ;;  %402 = vadd.xlane.f32.xlu0 %v401_v61  ;;  %v3277_v61 = vld [vmem:[%s2827_s30 + $0x178] sm:$0xff]  ;;  %v3280_v45 = vld [vmem:[%s2827_s30 + $0x170] sm:$0xff] }
  0xcb   : > { %v3234_v55 = vsel %vm821_vm4, %v636_v0, %v832_v7  ;;  %v382_v1 = vpop.xlane.xlu1 %381  ;;  %v379_v58 = vpop.xlane.xlu0 %378  ;;  %v410_v35 = vsel %vm268_vm0, %v3277_v61, 0.0 }
  0xcc   : > { %v698_v10 = vrot.slane %v382_v1, %v3121_v63  ;;  %v694_v11 = vrot.slane %v379_v58, %v3118_v62  ;;  %v407_v58 = vsel %vm268_vm0, %v3280_v45, 0.0 }
  0xce   : > { %v699_v12 = vsel %vm536_vm1, %v698_v10, %v694_v11  ;;  %447 = vadd.xlane.f32.xlu1 %v446_v59  ;;  %444 = vadd.xlane.f32.xlu0 %v443_v6  ;;  %v3293_v59 = vld [vmem:[%s2827_s30 + $0x1e8] sm:$0xff]  ;;  %v3296_v6 = vld [vmem:[%s2827_s30 + $0x1e0] sm:$0xff] }
  0xcf   : > { %v3244_v4 = vsel %vm819_vm3, %v699_v12, %v838_v38  ;;  %v418_v7 = vpop.xlane.xlu1 %417  ;;  %v415_v5 = vpop.xlane.xlu0 %414  ;;  %v452_v12 = vsel %vm268_vm0, %v3293_v59, 0.0 }
  0xd0   : > { %v752_v19 = vrot.slane %v418_v7, %v3121_v63  ;;  %v748_v22 = vrot.slane %v415_v5, %v3118_v62  ;;  %v449_v7 = vsel %vm268_vm0, %v3296_v6, 0.0 }
  0xd2   : > { %v753_v8 = vsel %vm536_vm1, %v752_v19, %v748_v22  ;;  %1283 = vmax.xlane.f32.xlu1 %v1282_v13  ;;  %1280 = vmax.xlane.f32.xlu0 %v1279_v17  ;;  %v1288_v17 = vsel %vm268_vm0, %v3092_v41, -inf  ;;  %v1285_v19 = vsel %vm268_vm0, %v3095_v52, -inf  ;;  %v1378_v52 = vsel %vm268_vm0, %v3124_v2, -inf  ;;  %v3340_v2 = vld [vmem:[%s2827_s30 + $0x1f0] sm:$0xff] }
  0xd3   : > { %v424_v9 = vpop.xlane.xlu1 %423  ;;  %v421_v23 = vpop.xlane.xlu0 %420 }
  0xd4   : > { %v761_v20 = vrot.slane %v424_v9, %v3121_v63  ;;  %v757_v21 = vrot.slane %v421_v23, %v3118_v62  ;;  %v1336_v9 = vsel %vm268_vm0, %v3106_v54, -inf  ;;  %v1333_v23 = vsel %vm268_vm0, %v3109_v49, -inf }
  0xd5   : > { %v1420_v49 = vsel %vm268_vm0, %v3138_v18, -inf }
  0xd6   : > { %v762_v38 = vsel %vm536_vm1, %v761_v20, %v757_v21  ;;  %1331 = vmax.xlane.f32.xlu1 %v1330_v26  ;;  %1328 = vmax.xlane.f32.xlu0 %v1327_v31  ;;  %v1375_v31 = vsel %vm268_vm0, %v3127_v3, -inf  ;;  %v1417_v21 = vsel %vm268_vm0, %v3141_v16, -inf }
  0xd7   : > { %v3261_v39 = vsel %vm817_vm2, %v762_v38, %v753_v8  ;;  %v1254_v42 = vpop.xlane.xlu1 %1253  ;;  %v1251_v43 = vpop.xlane.xlu0 %1250 }
  0xd8   : > { %v1512_v46 = vrot.slane %v1254_v42, %v3121_v63  ;;  %v1508_v47 = vrot.slane %v1251_v43, %v3118_v62  ;;  %v3337_v43 = vld [vmem:[%s2827_s30 + $0x1f8] sm:$0xff]  ;;  %s3861_s30 = scalar_lea.hbm %s3905_s3, %s2554_s23 }
  0xd9   : > { %v458_v16 = vsel %vm268_vm0, %v3337_v43, 0.0 }
  0xda   : > { %v1513_v50 = vsel %vm536_vm1, %v1512_v46, %v1508_v47  ;;  %1373 = vmax.xlane.f32.xlu1 %v1372_v24  ;;  %1370 = vmax.xlane.f32.xlu0 %v1369_v25  ;;  %v455_v46 = vsel %vm268_vm0, %v3340_v2, 0.0 }
  0xdb   : > { %v1260_v36 = vpop.xlane.xlu1 %1259  ;;  %v1257_v51 = vpop.xlane.xlu0 %1256 }
  0xdc   : > { %v1521_v29 = vrot.slane %v1260_v36, %v3121_v63  ;;  %v1517_v60 = vrot.slane %v1257_v51, %v3118_v62 }
  0xde   : > { %v1522_v53 = vsel %vm536_vm1, %v1521_v29, %v1517_v60  ;;  %1415 = vmax.xlane.f32.xlu1 %v1414_v40  ;;  %1412 = vmax.xlane.f32.xlu0 %v1411_v28  ;;  %v1294_v28 = vsel %vm268_vm0, %v3184_v14, -inf  ;;  %v1291_v29 = vsel %vm268_vm0, %v3187_v15, -inf }
  0xdf   : > { %v1793_v0 = vsel %vm817_vm2, %v1522_v53, %v1513_v50  ;;  %v3284_v1 = vpop.xlane.xlu1 %1301  ;;  %v3286_v34 = vpop.xlane.xlu0 %1298 }
  0xe2   : > { %411 = vadd.xlane.f32.xlu1 %v410_v35  ;;  %408 = vadd.xlane.f32.xlu0 %v407_v58  ;;  %v1342_v35 = vsel %vm268_vm0, %v3197_v27, -inf  ;;  %v1384_v27 = vsel %vm268_vm0, %v3211_v32, -inf  ;;  %v1423_v32 = vsel %vm268_vm0, %v3230_v57, -inf }
  0xe3   : > { %v3298_v10 = vpop.xlane.xlu1 %1307  ;;  %v3300_v11 = vpop.xlane.xlu0 %1304 }
  0xe6   : > { %453 = vadd.xlane.f32.xlu1 %v452_v12  ;;  %450 = vadd.xlane.f32.xlu0 %v449_v7 }
  0xe7   : > { %v3306_v5 = vpop.xlane.xlu1 %297  ;;  %v3308_v13 = vpop.xlane.xlu0 %294 }
  0xe8   : > { %v572_v14 = vrot.slane %v3306_v5, %v3121_v63  ;;  %v568_v15 = vrot.slane %v3308_v13, %v3118_v62  ;;  %v1426_v13 = vsel %vm268_vm0, %v3227_v56, -inf }
  0xea   : > { %1289 = vmax.xlane.f32.xlu1 %v1288_v17  ;;  %1286 = vmax.xlane.f32.xlu0 %v1285_v19 }
  0xeb   : > { %v3314_v22 = vpop.xlane.xlu1 %345  ;;  %v3316_v8 = vpop.xlane.xlu0 %342 }
  0xee   : > { %1337 = vmax.xlane.f32.xlu1 %v1336_v9  ;;  %1334 = vmax.xlane.f32.xlu0 %v1333_v23 }
  0xef   : > { %v3322_v41 = vpop.xlane.xlu1 %387  ;;  %v3324_v26 = vpop.xlane.xlu0 %384 }
  0xf2   : > { %1379 = vmax.xlane.f32.xlu1 %v1378_v52  ;;  %1376 = vmax.xlane.f32.xlu0 %v1375_v31  ;;  %v573_v52 = vsel %vm536_vm1, %v572_v14, %v568_v15  ;;  %v640_v31 = vrot.slane %v3316_v8, %v3118_v62  ;;  %v1387_v8 = vsel %vm268_vm0, %v3280_v45, -inf }
  0xf3   : > { %v430_v54 = vpop.xlane.xlu1 %429  ;;  %v427_v20 = vpop.xlane.xlu0 %426  ;;  %v824_v57 = vsel %vm823_vm5, %v573_v52, %v3218_v37 }
  0xf4   : > { %v770_v38 = vrot.slane %v430_v54, %v3121_v63  ;;  %v766_v42 = vrot.slane %v427_v20, %v3118_v62 }
  0xf6   : > { %v771_v3 = vsel %vm536_vm1, %v770_v38, %v766_v42  ;;  %1421 = vmax.xlane.f32.xlu1 %v1420_v49  ;;  %1418 = vmax.xlane.f32.xlu0 %v1417_v21 }
  0xf7   : > { %v3345_v24 = vsel %vm819_vm3, %v771_v3, %v3261_v39  ;;  %v1266_v18 = vpop.xlane.xlu1 %1265  ;;  %v1263_v25 = vpop.xlane.xlu0 %1262  ;;  %v707_v3 = vrot.slane %v3322_v41, %v3121_v63 }
  0xf8   : > { %v1530_v47 = vrot.slane %v1266_v18, %v3121_v63  ;;  %v1526_v50 = vrot.slane %v1263_v25, %v3118_v62  ;;  %v703_v18 = vrot.slane %v3324_v26, %v3118_v62 }
  0xfa   : > { %v1531_v36 = vsel %vm536_vm1, %v1530_v47, %v1526_v50  ;;  %459 = vadd.xlane.f32.xlu1 %v458_v16  ;;  %456 = vadd.xlane.f32.xlu0 %v455_v46  ;;  %v708_v41 = vsel %vm536_vm1, %v707_v3, %v703_v18 }
  0xfb   : > { %v3355_v51 = vsel %vm819_vm3, %v1531_v36, %v1793_v0  ;;  %v3357_v39 = vpop.xlane.xlu1 %1313  ;;  %v3359_v40 = vpop.xlane.xlu0 %1310  ;;  %v1339_v0 = vsel %vm268_vm0, %v3200_v30, -inf  ;;  %v1381_v30 = vsel %vm268_vm0, %v3214_v33, -inf  ;;  %v644_v33 = vrot.slane %v3314_v22, %v3121_v63 }
  0xfc   : > { %v1390_v22 = vsel %vm268_vm0, %v3277_v61, -inf  ;;  %v1432_v36 = vsel %vm268_vm0, %v3293_v59, -inf }
  0xfd   : > { %v645_v42 = vsel %vm536_vm1, %v644_v33, %v640_v31 }
  0xfe   : > { %1295 = vmax.xlane.f32.xlu1 %v1294_v28  ;;  %1292 = vmax.xlane.f32.xlu0 %v1291_v29  ;;  %v834_v45 = vsel %vm823_vm5, %v645_v42, %v3234_v55  ;;  %v1429_v28 = vsel %vm268_vm0, %v3296_v6, -inf  ;;  %v1438_v6 = vsel %vm268_vm0, %v3337_v43, -inf  ;;  %v1602_v43 = vrot.slane %v3357_v39, %v3121_v63 }
  0xff   : > { %v1350_v60 = vpop.xlane.xlu1 %1349  ;;  %v1347_v53 = vpop.xlane.xlu0 %1346 }
 0x100   : > { %v1656_v58 = vrot.slane %v1350_v60, %v3121_v63  ;;  %v1652_v12 = vrot.slane %v1347_v53, %v3118_v62  ;;  %v840_v53 = vsel %vm821_vm4, %v708_v41, %v3244_v4  ;;  %v1593_v4 = vrot.slane %v3298_v10, %v3121_v63 }
 0x101   : > { %v1584_v10 = vrot.slane %v3284_v1, %v3121_v63 }
 0x102   : > { %1343 = vmax.xlane.f32.xlu1 %v1342_v35  ;;  %1340 = vmax.xlane.f32.xlu0 %v1339_v0  ;;  %v1657_v23 = vsel %vm536_vm1, %v1656_v58, %v1652_v12  ;;  %v1435_v12 = vsel %vm268_vm0, %v3340_v2, -inf  ;;  %v1598_v2 = vrot.slane %v3359_v40, %v3118_v62 }
 0x103   : > { %v1356_v7 = vpop.xlane.xlu1 %1355  ;;  %v1353_v17 = vpop.xlane.xlu0 %1352 }
 0x104   : > { %v1665_v19 = vrot.slane %v1356_v7, %v3121_v63  ;;  %v1661_v9 = vrot.slane %v1353_v17, %v3118_v62  ;;  %v1589_v7 = vrot.slane %v3300_v11, %v3118_v62  ;;  %v1580_v11 = vrot.slane %v3286_v34, %v3118_v62 }
 0x105   : > { %v1603_v40 = vsel %vm536_vm1, %v1602_v43, %v1598_v2 }
 0x106   : > { %v1666_v5 = vsel %vm536_vm1, %v1665_v19, %v1661_v9  ;;  %1385 = vmax.xlane.f32.xlu1 %v1384_v27  ;;  %1382 = vmax.xlane.f32.xlu0 %v1381_v30  ;;  %v1594_v39 = vsel %vm536_vm1, %v1593_v4, %v1589_v7  ;;  %v1585_v1 = vsel %vm536_vm1, %v1584_v10, %v1580_v11 }
 0x107   : > { %v3393_v54 = vsel %vm817_vm2, %v1666_v5, %v1657_v23  ;;  %v304_v20 = vpop.xlane.xlu1 %303  ;;  %v301_v49 = vpop.xlane.xlu0 %300  ;;  %v1800_v33 = vsel %vm817_vm2, %v1594_v39, %v1585_v1 }
 0x108   : > { %v581_v21 = vrot.slane %v304_v20, %v3121_v63  ;;  %v577_v56 = vrot.slane %v301_v49, %v3118_v62  ;;  %v1801_v31 = vsel %vm819_vm3, %v1603_v40, %v1800_v33 }
 0x10a   : > { %v582_v38 = vsel %vm536_vm1, %v581_v21, %v577_v56  ;;  %1427 = vmax.xlane.f32.xlu1 %v1426_v13  ;;  %1424 = vmax.xlane.f32.xlu0 %v1423_v32 }
 0x10b   : > { %v352_v25 = vpop.xlane.xlu1 %351  ;;  %v349_v37 = vpop.xlane.xlu0 %348  ;;  %v3410_v16 = vsel %vm825_vm6, %v582_v38, %v824_v57 }
 0x10c   : > { %v653_v46 = vrot.slane %v352_v25, %v3121_v63  ;;  %v649_v61 = vrot.slane %v349_v37, %v3118_v62 }
 0x10e   : > { %v654_v47 = vsel %vm536_vm1, %v653_v46, %v649_v61  ;;  %1391 = vmax.xlane.f32.xlu1 %v1390_v22  ;;  %1388 = vmax.xlane.f32.xlu0 %v1387_v8 }
 0x10f   : > { %v394_v50 = vpop.xlane.xlu1 %393  ;;  %v391_v26 = vpop.xlane.xlu0 %390  ;;  %v3423_v29 = vsel %vm825_vm6, %v654_v47, %v834_v45 }
 0x110   : > { %v716_v60 = vrot.slane %v394_v50, %v3121_v63  ;;  %v712_v55 = vrot.slane %v391_v26, %v3118_v62 }
 0x112   : > { %v717_v35 = vsel %vm536_vm1, %v716_v60, %v712_v55  ;;  %1433 = vmax.xlane.f32.xlu1 %v1432_v36  ;;  %1430 = vmax.xlane.f32.xlu0 %v1429_v28 }
 0x113   : > { %v3431_v0 = vsel %vm823_vm5, %v717_v35, %v840_v53  ;;  %v436_v59 = vpop.xlane.xlu1 %435  ;;  %v433_v58 = vpop.xlane.xlu0 %432 }
 0x114   : > { %v779_v14 = vrot.slane %v436_v59, %v3121_v63  ;;  %v775_v15 = vrot.slane %v433_v58, %v3118_v62 }
 0x116   : > { %v780_v17 = vsel %vm536_vm1, %v779_v14, %v775_v15  ;;  %1439 = vmax.xlane.f32.xlu1 %v1438_v6  ;;  %1436 = vmax.xlane.f32.xlu0 %v1435_v12 }
 0x117   : > { %v847_v27 = vsel %vm821_vm4, %v780_v17, %v3345_v24  ;;  %v1272_v30 = vpop.xlane.xlu1 %1271  ;;  %v1269_v19 = vpop.xlane.xlu0 %1268 }
 0x118   : > { %v1539_v9 = vrot.slane %v1272_v30, %v3121_v63  ;;  %v1535_v23 = vrot.slane %v1269_v19, %v3118_v62 }
 0x11a   : > { %v1540_v5 = vsel %vm536_vm1, %v1539_v9, %v1535_v23 }
 0x11b   : > { %v1795_v24 = vsel %vm821_vm4, %v1540_v5, %v3355_v51  ;;  %v1320_v13 = vpop.xlane.xlu1 %1319  ;;  %v1317_v32 = vpop.xlane.xlu0 %1316 }
 0x11c   : > { %v1611_v52 = vrot.slane %v1320_v13, %v3121_v63  ;;  %v1607_v34 = vrot.slane %v1317_v32, %v3118_v62 }
 0x11e   : > { %v1612_v20 = vsel %vm536_vm1, %v1611_v52, %v1607_v34 }
 0x11f   : > { %v1802_v49 = vsel %vm821_vm4, %v1612_v20, %v1801_v31  ;;  %v1362_v21 = vpop.xlane.xlu1 %1361  ;;  %v1359_v56 = vpop.xlane.xlu0 %1358 }
 0x120   : > { %v1674_v51 = vrot.slane %v1362_v21, %v3121_v63  ;;  %v1670_v57 = vrot.slane %v1359_v56, %v3118_v62 }
 0x122   : > { %v1675_v38 = vsel %vm536_vm1, %v1674_v51, %v1670_v57 }
 0x123   : > { %v1808_v22 = vsel %vm819_vm3, %v1675_v38, %v3393_v54  ;;  %v1398_v8 = vpop.xlane.xlu1 %1397  ;;  %v1395_v42 = vpop.xlane.xlu0 %1394 }
 0x124   : > { %v1728_v3 = vrot.slane %v1398_v8, %v3121_v63  ;;  %v1724_v18 = vrot.slane %v1395_v42, %v3118_v62 }
 0x126   : > { %v1729_v25 = vsel %vm536_vm1, %v1728_v3, %v1724_v18 }
 0x127   : > { %v1404_v37 = vpop.xlane.xlu1 %1403  ;;  %v1401_v46 = vpop.xlane.xlu0 %1400 }
 0x128   : > { %v1737_v61 = vrot.slane %v1404_v37, %v3121_v63  ;;  %v1733_v45 = vrot.slane %v1401_v46, %v3118_v62 }
 0x12a   : > { %v1738_v47 = vsel %vm536_vm1, %v1737_v61, %v1733_v45 }
 0x12b   : > { %v1814_v41 = vsel %vm817_vm2, %v1738_v47, %v1729_v25  ;;  %v310_v50 = vpop.xlane.xlu1 %309  ;;  %v307_v54 = vpop.xlane.xlu0 %306 }
 0x12c   : > { %v590_v40 = vrot.slane %v310_v50, %v3121_v63 }
 0x12f   : > { %v358_v26 = vpop.xlane.xlu1 %357  ;;  %v355_v36 = vpop.xlane.xlu0 %354 }
 0x130   : > { %v662_v20 = vrot.slane %v358_v26, %v3121_v63 }
 0x133   : > { %v3480_v28 = vpop.xlane.xlu1 %399  ;;  %v3482_v60 = vpop.xlane.xlu0 %396 }
 0x137   : > { %v442_v55 = vpop.xlane.xlu1 %441  ;;  %v439_v53 = vpop.xlane.xlu0 %438 }
 0x138   : > { %v788_v35 = vrot.slane %v442_v55, %v3121_v63  ;;  %v784_v59 = vrot.slane %v439_v53, %v3118_v62 }
 0x13a   : > { %v789_v58 = vsel %vm536_vm1, %v788_v35, %v784_v59 }
 0x13b   : > { %v3488_v6 = vsel %vm823_vm5, %v789_v58, %v847_v27  ;;  %v1278_v12 = vpop.xlane.xlu1 %1277  ;;  %v1275_v14 = vpop.xlane.xlu0 %1274  ;;  %v2741_v58 = vmov 0  }
 0x13c   : > { %v1548_v15 = vrot.slane %v1278_v12, %v3121_v63  ;;  %v1544_v4 = vrot.slane %v1275_v14, %v3118_v62  ;;  %2657 = vset.pattern.permute.xlu0 %v2741_v58  ;;  %2658 = vset.pattern.permute.xlu1 %v2741_v58  ;;  %v725_v14 = vrot.slane %v3480_v28, %v3121_v63 }
 0x13e   : > { %v1549_v7 = vsel %vm536_vm1, %v1548_v15, %v1544_v4  ;;  %v721_v15 = vrot.slane %v3482_v60, %v3118_v62 }
 0x13f   : > { %v3494_v17 = vsel %vm823_vm5, %v1549_v7, %v1795_v24  ;;  %v1326_v43 = vpop.xlane.xlu1 %1325  ;;  %v1323_v2 = vpop.xlane.xlu0 %1322  ;;  %v586_v24 = vrot.slane %v307_v54, %v3118_v62 }
 0x140   : > { %v1620_v30 = vrot.slane %v1326_v43, %v3121_v63  ;;  %v1616_v19 = vrot.slane %v1323_v2, %v3118_v62 }
 0x141   : > { %v591_v31 = vsel %vm536_vm1, %v590_v40, %v586_v24 }
 0x142   : > { %v1621_v27 = vsel %vm536_vm1, %v1620_v30, %v1616_v19  ;;  %v828_v8 = vsel %vm827_vm7, %v591_v31, %v3410_v16  ;;  %v726_v30 = vsel %vm536_vm1, %v725_v14, %v721_v15 }
 0x143   : > { %v3500_v10 = vsel %vm823_vm5, %v1621_v27, %v1802_v49  ;;  %v1368_v11 = vpop.xlane.xlu1 %1367  ;;  %v1365_v9 = vpop.xlane.xlu0 %1364  ;;  %v658_v49 = vrot.slane %v355_v36, %v3118_v62  ;;  %v842_v60 = vsel %vm825_vm6, %v726_v30, %v3431_v0 }
 0x144   : > { %v1683_v23 = vrot.slane %v1368_v11, %v3121_v63  ;;  %v1679_v39 = vrot.slane %v1365_v9, %v3118_v62 }
 0x145   : > { %v663_v42 = vsel %vm536_vm1, %v662_v20, %v658_v49 }
 0x146   : > { %v1684_v5 = vsel %vm536_vm1, %v1683_v23, %v1679_v39  ;;  %v836_v47 = vsel %vm827_vm7, %v663_v42, %v3423_v29 }
 0x147   : > { %v3508_v13 = vsel %vm821_vm4, %v1684_v5, %v1808_v22  ;;  %v1410_v32 = vpop.xlane.xlu1 %1409  ;;  %v1407_v1 = vpop.xlane.xlu0 %1406 }
 0x148   : > { %v1746_v52 = vrot.slane %v1410_v32, %v3121_v63  ;;  %v1742_v34 = vrot.slane %v1407_v1, %v3118_v62 }
 0x14a   : > { %v1747_v33 = vsel %vm536_vm1, %v1746_v52, %v1742_v34 }
 0x14b   : > { %v3517_v21 = vsel %vm819_vm3, %v1747_v33, %v1814_v41  ;;  %v316_v56 = vpop.xlane.xlu1 %315  ;;  %v313_v51 = vpop.xlane.xlu0 %312 }
 0x14c   : > { %v599_v57 = vrot.slane %v316_v56, %v3121_v63  ;;  %v595_v38 = vrot.slane %v313_v51, %v3118_v62 }
 0x14e   : > { %v600_v22 = vsel %vm536_vm1, %v599_v57, %v595_v38 }
 0x14f   : > { %v364_v3 = vpop.xlane.xlu1 %363  ;;  %v361_v18 = vpop.xlane.xlu0 %360  ;;  %v830_v25 = vsel %vm829_vm8, %v600_v22, %v828_v8 }
 0x150   : > { %v671_v37 = vrot.slane %v364_v3, %v3121_v63  ;;  %v667_v46 = vrot.slane %v361_v18, %v3118_v62  ;;  %v856_v61 = vsel %vm268_vm0, %v830_v25, 0.0 }
 0x151   : > { %857 = vadd.xlane.f32.xlu0 %v856_v61 }
 0x152   : > { %v672_v45 = vsel %vm536_vm1, %v671_v37, %v667_v46 }
 0x153   : > { %v406_v41 = vpop.xlane.xlu1 %405  ;;  %v403_v16 = vpop.xlane.xlu0 %402  ;;  %v837_v50 = vsel %vm829_vm8, %v672_v45, %v836_v47 }
 0x154   : > { %v859_v54 = vsel %vm268_vm0, %v837_v50, 0.0  ;;  %v734_v4 = vrot.slane %v406_v41, %v3121_v63  ;;  %v730_v7 = vrot.slane %v403_v16, %v3118_v62 }
 0x155   : > { %860 = vadd.xlane.f32.xlu1 %v859_v54 }
 0x156   : > { %v735_v19 = vsel %vm536_vm1, %v734_v4, %v730_v7 }
 0x157   : > { %v448_v26 = vpop.xlane.xlu1 %447  ;;  %v445_v36 = vpop.xlane.xlu0 %444  ;;  %v843_v39 = vsel %vm827_vm7, %v735_v19, %v842_v60 }
 0x158   : > { %v797_v0 = vrot.slane %v448_v26, %v3121_v63  ;;  %v793_v49 = vrot.slane %v445_v36, %v3118_v62 }
 0x15a   : > { %v798_v42 = vsel %vm536_vm1, %v797_v0, %v793_v49 }
 0x15b   : > { %v1284_v55 = vpop.xlane.xlu1 %1283  ;;  %v1281_v53 = vpop.xlane.xlu0 %1280  ;;  %v849_v41 = vsel %vm825_vm6, %v798_v42, %v3488_v6 }
 0x15c   : > { %v1557_v22 = vrot.slane %v1284_v55, %v3121_v63  ;;  %v1553_v8 = vrot.slane %v1281_v53, %v3118_v62 }
 0x15e   : > { %v1558_v47 = vsel %vm536_vm1, %v1557_v22, %v1553_v8 }
 0x15f   : > { %v3534_v35 = vpop.xlane.xlu1 %1331  ;;  %v3536_v59 = vpop.xlane.xlu0 %1328  ;;  %v1797_v4 = vsel %vm825_vm6, %v1558_v47, %v3494_v17 }
 0x160   : > { %v1629_v16 = vrot.slane %v3534_v35, %v3121_v63  ;;  %v1625_v50 = vrot.slane %v3536_v59, %v3118_v62 }
 0x162   : > { %v1630_v7 = vsel %vm536_vm1, %v1629_v16, %v1625_v50 }
 0x163   : > { %v3538_v12 = vpop.xlane.xlu1 %1373  ;;  %v3540_v29 = vpop.xlane.xlu0 %1370  ;;  %v1804_v17 = vsel %vm825_vm6, %v1630_v7, %v3500_v10 }
 0x167   : > { %v3548_v43 = vpop.xlane.xlu1 %1415  ;;  %v3550_v2 = vpop.xlane.xlu0 %1412 }
 0x16b   : > { %v412_v27 = vpop.xlane.xlu1 %411  ;;  %v409_v11 = vpop.xlane.xlu0 %408 }
 0x16c   : > { %v743_v9 = vrot.slane %v412_v27, %v3121_v63  ;;  %v739_v28 = vrot.slane %v409_v11, %v3118_v62 }
 0x16e   : > { %v744_v23 = vsel %vm536_vm1, %v743_v9, %v739_v28 }
 0x16f   : > { %v454_v5 = vpop.xlane.xlu1 %453  ;;  %v451_v40 = vpop.xlane.xlu0 %450  ;;  %v844_v24 = vsel %vm829_vm8, %v744_v23, %v843_v39 }
 0x170   : > { %v862_v32 = vsel %vm268_vm0, %v844_v24, 0.0  ;;  %v806_v56 = vrot.slane %v454_v5, %v3121_v63  ;;  %v802_v51 = vrot.slane %v451_v40, %v3118_v62 }
 0x171   : > { %863 = vadd.xlane.f32.xlu0 %v862_v32 }
 0x172   : > { %v807_v3 = vsel %vm536_vm1, %v806_v56, %v802_v51 }
 0x173   : > { %v1290_v1 = vpop.xlane.xlu1 %1289  ;;  %v1287_v52 = vpop.xlane.xlu0 %1286  ;;  %v850_v26 = vsel %vm827_vm7, %v807_v3, %v849_v41 }
 0x174   : > { %v1566_v18 = vrot.slane %v1290_v1, %v3121_v63  ;;  %v1562_v25 = vrot.slane %v1287_v52, %v3118_v62  ;;  %v1692_v52 = vrot.slane %v3538_v12, %v3121_v63 }
 0x176   : > { %v1567_v36 = vsel %vm536_vm1, %v1566_v18, %v1562_v25  ;;  %v1751_v18 = vrot.slane %v3550_v2, %v3118_v62 }
 0x177   : > { %v1338_v34 = vpop.xlane.xlu1 %1337  ;;  %v1335_v33 = vpop.xlane.xlu0 %1334  ;;  %v1798_v19 = vsel %vm827_vm7, %v1567_v36, %v1797_v4 }
 0x178   : > { %v1638_v55 = vrot.slane %v1338_v34, %v3121_v63  ;;  %v1634_v53 = vrot.slane %v1335_v33, %v3118_v62  ;;  %v1688_v34 = vrot.slane %v3540_v29, %v3118_v62 }
 0x17a   : > { %v1639_v27 = vsel %vm536_vm1, %v1638_v55, %v1634_v53  ;;  %v1693_v12 = vsel %vm536_vm1, %v1692_v52, %v1688_v34 }
 0x17b   : > { %v3562_v31 = vpop.xlane.xlu1 %1379  ;;  %v3564_v20 = vpop.xlane.xlu0 %1376  ;;  %v1805_v40 = vsel %vm827_vm7, %v1639_v27, %v1804_v17  ;;  %v1810_v29 = vsel %vm823_vm5, %v1693_v12, %v3508_v13  ;;  %v2742_v27 = vmov 1966171168   ;;  %v3675_v17 = vsub.s32 4, %v3103_v48 }
 0x17c   : > { %v1701_v10 = vrot.slane %v3562_v31, %v3121_v63  ;;  %v1697_v0 = vrot.slane %v3564_v20, %v3118_v62  ;;  %v1755_v20 = vrot.slane %v3548_v43, %v3121_v63 }
 0x17e   : > { %v1702_v8 = vsel %vm536_vm1, %v1701_v10, %v1697_v0 }
 0x17f   : > { %v3570_v57 = vpop.xlane.xlu1 %1421  ;;  %v3572_v38 = vpop.xlane.xlu0 %1418 }
 0x180   : > { %v1760_v13 = vrot.slane %v3572_v38, %v3118_v62 }
 0x183   : > { %v460_v37 = vpop.xlane.xlu1 %459  ;;  %v457_v46 = vpop.xlane.xlu0 %456 }
 0x184   : > { %v815_v61 = vrot.slane %v460_v37, %v3121_v63  ;;  %v811_v45 = vrot.slane %v457_v46, %v3118_v62  ;;  %v1764_v46 = vrot.slane %v3570_v57, %v3121_v63 }
 0x186   : > { %v816_v54 = vsel %vm536_vm1, %v815_v61, %v811_v45  ;;  %v1811_v61 = vsel %vm825_vm6, %v1702_v8, %v1810_v29  ;;  %v1765_v36 = vsel %vm536_vm1, %v1764_v46, %v1760_v13 }
 0x187   : > { %v1296_v58 = vpop.xlane.xlu1 %1295  ;;  %v1293_v14 = vpop.xlane.xlu0 %1292  ;;  %v851_v6 = vsel %vm829_vm8, %v816_v54, %v850_v26  ;;  %v1756_v54 = vsel %vm536_vm1, %v1755_v20, %v1751_v18 }
 0x188   : > { %v1575_v15 = vrot.slane %v1296_v58, %v3121_v63  ;;  %v1571_v35 = vrot.slane %v1293_v14, %v3118_v62  ;;  %v865_v59 = vsel %vm268_vm0, %v851_v6, 0.0  ;;  %v1816_v53 = vsel %vm821_vm4, %v1756_v54, %v3517_v21 }
 0x189   : > { %866 = vadd.xlane.f32.xlu1 %v865_v59 }
 0x18a   : > { %v1576_v30 = vsel %vm536_vm1, %v1575_v15, %v1571_v35  ;;  %v1817_v15 = vsel %vm823_vm5, %v1765_v36, %v1816_v53 }
 0x18b   : > { %v1344_v11 = vpop.xlane.xlu1 %1343  ;;  %v1341_v9 = vpop.xlane.xlu0 %1340  ;;  %v1799_v28 = vsel %vm829_vm8, %v1576_v30, %v1798_v19 }
 0x18c   : > { %v1647_v60 = vrot.slane %v1344_v11, %v3121_v63  ;;  %v1643_v23 = vrot.slane %v1341_v9, %v3118_v62  ;;  %v1825_v39 = vsel %vm268_vm0, %v1799_v28, -inf  ;;  %v1005_v11 = vunpack.c.l.s4 %v2742_v27 }
 0x18d   : > { %1826 = vmax.xlane.f32.xlu0 %v1825_v39  ;;  %v3663_v28 = vsub.s32 0, %v3103_v48  ;;  %v3672_v39 = vsub.s32 3, %v3103_v48 }
 0x18e   : > { %v1648_v5 = vsel %vm536_vm1, %v1647_v60, %v1643_v23  ;;  %v1006_v9 = vunpack.c.0.s8 %v1005_v11  ;;  %v3666_v60 = vsub.s32 1, %v3103_v48  ;;  %v3669_v23 = vsub.s32 2, %v3103_v48 }
 0x18f   : > { %v1386_v24 = vpop.xlane.xlu1 %1385  ;;  %v1383_v32 = vpop.xlane.xlu0 %1382  ;;  %v1806_v1 = vsel %vm829_vm8, %v1648_v5, %v1805_v40  ;;  %v3678_v5 = vsub.s32 5, %v3103_v48  ;;  %v3681_v40 = vsub.s32 6, %v3103_v48 }
 0x190   : > { %v1828_v33 = vsel %vm268_vm0, %v1806_v1, -inf  ;;  %v1710_v49 = vrot.slane %v1386_v24, %v3121_v63  ;;  %v1706_v56 = vrot.slane %v1383_v32, %v3118_v62  ;;  %v3684_v24 = vsub.s32 7, %v3103_v48 }
 0x191   : > { %1829 = vmax.xlane.f32.xlu1 %v1828_v33  ;;  %v3687_v1 = vsub.s32 %v1006_v9, %v3103_v48 }
 0x192   : > { %v1711_v42 = vsel %vm536_vm1, %v1710_v49, %v1706_v56 }
 0x193   : > { %v1428_v51 = vpop.xlane.xlu1 %1427  ;;  %v1425_v22 = vpop.xlane.xlu0 %1424  ;;  %v1812_v2 = vsel %vm827_vm7, %v1711_v42, %v1811_v61 }
 0x194   : > { %v1773_v45 = vrot.slane %v1428_v51, %v3121_v63  ;;  %v1769_v47 = vrot.slane %v1425_v22, %v3118_v62 }
 0x196   : > { %v1774_v55 = vsel %vm536_vm1, %v1773_v45, %v1769_v47 }
 0x197   : > { %v1392_v3 = vpop.xlane.xlu1 %1391  ;;  %v1389_v31 = vpop.xlane.xlu0 %1388  ;;  %v1818_v4 = vsel %vm825_vm6, %v1774_v55, %v1817_v15 }
 0x198   : > { %v1719_v25 = vrot.slane %v1392_v3, %v3121_v63  ;;  %v1715_v37 = vrot.slane %v1389_v31, %v3118_v62 }
 0x19a   : > { %v1720_v43 = vsel %vm536_vm1, %v1719_v25, %v1715_v37 }
 0x19b   : > { %v1434_v41 = vpop.xlane.xlu1 %1433  ;;  %v1431_v16 = vpop.xlane.xlu0 %1430  ;;  %v1813_v50 = vsel %vm829_vm8, %v1720_v43, %v1812_v2 }
 0x19c   : > { %v1782_v57 = vrot.slane %v1434_v41, %v3121_v63  ;;  %v1778_v38 = vrot.slane %v1431_v16, %v3118_v62  ;;  %v1831_v26 = vsel %vm268_vm0, %v1813_v50, -inf }
 0x19d   : > { %1832 = vmax.xlane.f32.xlu0 %v1831_v26 }
 0x19e   : > { %v1783_v58 = vsel %vm536_vm1, %v1782_v57, %v1778_v38 }
 0x19f   : > { %v1440_v14 = vpop.xlane.xlu1 %1439  ;;  %v1437_v6 = vpop.xlane.xlu0 %1436  ;;  %v1819_v30 = vsel %vm827_vm7, %v1783_v58, %v1818_v4 }
 0x1a0   : > { %v1791_v35 = vrot.slane %v1440_v14, %v3121_v63  ;;  %v1787_v59 = vrot.slane %v1437_v6, %v3118_v62 }
 0x1a2   : > { %v1792_v7 = vsel %vm536_vm1, %v1791_v35, %v1787_v59 }
 0x1a3   : > { %v1820_v19 = vsel %vm829_vm8, %v1792_v7, %v1819_v30 }
 0x1a4   : > { %v1834_v21 = vsel %vm268_vm0, %v1820_v19, -inf }
 0x1a5   : > { %1835 = vmax.xlane.f32.xlu1 %v1834_v21 }
 0x1da   : > { %v858_v32 = vpop.xlane.xlu0 %857 }
 0x1db   : > { %v875_v52 = vrot.slane %v858_v32, %v3663_v28  ;;  %v879_v34 = vrot.slane %v858_v32, %v3666_v60  ;;  %v883_v33 = vrot.slane %v858_v32, %v3669_v23  ;;  %v887_v10 = vrot.slane %v858_v32, %v3672_v39 }
 0x1dc   : > { %v891_v0 = vrot.slane %v858_v32, %v3675_v17  ;;  %v895_v49 = vrot.slane %v858_v32, %v3678_v5  ;;  %v899_v56 = vrot.slane %v858_v32, %v3681_v40  ;;  %v903_v51 = vrot.slane %v858_v32, %v3684_v24 }
 0x1dd   : > { %v1000_v22 = vcombine.low %v875_v52, %v879_v34  ;;  %v1001_v12 = vcombine.low %v883_v33, %v887_v10 }
 0x1de   : > { %v861_v8 = vpop.xlane.xlu1 %860  ;;  %v1002_v29 = vcombine.low %v891_v0, %v895_v49  ;;  %v1003_v42 = vcombine.low %v899_v56, %v903_v51 }
 0x1df   : > { %v1010_v3 = vrot.slane %v1000_v22, %v3687_v1  ;;  %v1017_v31 = vrot.slane %v1001_v12, %v3687_v1  ;;  %v907_v20 = vrot.slane %v861_v8, %v3663_v28  ;;  %v911_v18 = vrot.slane %v861_v8, %v3666_v60 }
 0x1e0   : > { %v1024_v25 = vrot.slane %v1002_v29, %v3687_v1  ;;  %v1031_v37 = vrot.slane %v1003_v42, %v3687_v1  ;;  %v915_v46 = vrot.slane %v861_v8, %v3669_v23  ;;  %v919_v13 = vrot.slane %v861_v8, %v3672_v39 }
 0x1e1   : > { %v1032_v61 = vcombine.low %v1010_v3, %v1017_v31  ;;  %v923_v45 = vrot.slane %v861_v8, %v3675_v17  ;;  %v927_v47 = vrot.slane %v861_v8, %v3678_v5  ;;  %v931_v43 = vrot.slane %v861_v8, %v3681_v40 }
 0x1e2   : > { %v1033_v2 = vcombine.low %v1024_v25, %v1031_v37  ;;  %v935_v41 = vrot.slane %v861_v8, %v3684_v24  ;;  %v1049_v16 = vcombine.low %v907_v20, %v911_v18  ;;  %v1050_v50 = vcombine.low %v915_v46, %v919_v13 }
 0x1e3   : > { %v1040_v54 = vrot.slane %v1032_v61, %v3687_v1  ;;  %v1051_v57 = vcombine.low %v923_v45, %v927_v47  ;;  %v2743_v31 = vmov 0.0  }
 0x1e4   : > { %v1047_v38 = vrot.slane %v1033_v2, %v3687_v1  ;;  %v1052_v26 = vcombine.low %v931_v43, %v935_v41  ;;  %v1059_v36 = vrot.slane %v1049_v16, %v3687_v1  ;;  %v1066_v55 = vrot.slane %v1050_v50, %v3687_v1  ;;  %201 = vst.msk [vmem:[#allocation2] sm:$0x1] %vm200_vm9, %v2743_v31 }
 0x1e5   : > { %v1073_v53 = vrot.slane %v1051_v57, %v3687_v1  ;;  %2570 = vmatprep.subr.mxu0 %v2743_v31  ;;  %2581 = vmatprep.subr.mxu1 %v2743_v31 }
 0x1e6   : > { %v1048_v58 = vcombine.low %v1040_v54, %v1047_v38  ;;  %v1080_v14 = vrot.slane %v1052_v26, %v3687_v1  ;;  %v1081_v6 = vcombine.low %v1059_v36, %v1066_v55  ;;  %2578 = vmatprep.mubr.msk.f32.mxu0 %vm2744_vm10, %v2743_v31  ;;  %2589 = vmatprep.mubr.msk.f32.mxu1 %vm2744_vm10, %v2743_v31 }
 0x1e8   : > { %1197 = vperm.xlu0 %2657, %v1048_v58   ;;  %v1082_v15 = vcombine.low %v1073_v53, %v1080_v14  ;;  %v1089_v35 = vrot.slane %v1081_v6, %v3687_v1 }
 0x1ea   : > { %v1096_v59 = vrot.slane %v1082_v15, %v3687_v1 }
 0x1ec   : > { %v1097_v4 = vcombine.low %v1089_v35, %v1096_v59 }
 0x1ee   : > { %1200 = vperm.xlu1 %2658, %v1097_v4  }
 0x1fa   : > { %v864_v7 = vpop.xlane.xlu0 %863 }
 0x1fb   : > { %v939_v30 = vrot.slane %v864_v7, %v3663_v28  ;;  %v943_v19 = vrot.slane %v864_v7, %v3666_v60  ;;  %v947_v21 = vrot.slane %v864_v7, %v3669_v23  ;;  %v951_v27 = vrot.slane %v864_v7, %v3672_v39 }
 0x1fc   : > { %v955_v11 = vrot.slane %v864_v7, %v3675_v17  ;;  %v959_v9 = vrot.slane %v864_v7, %v3678_v5  ;;  %v963_v32 = vrot.slane %v864_v7, %v3681_v40  ;;  %v967_v52 = vrot.slane %v864_v7, %v3684_v24 }
 0x1fd   : > { %v1098_v34 = vcombine.low %v939_v30, %v943_v19  ;;  %v1099_v33 = vcombine.low %v947_v21, %v951_v27 }
 0x1fe   : > { %v1100_v10 = vcombine.low %v955_v11, %v959_v9  ;;  %v1101_v0 = vcombine.low %v963_v32, %v967_v52 }
 0x1ff   : > { %v1108_v49 = vrot.slane %v1098_v34, %v3687_v1  ;;  %v1115_v56 = vrot.slane %v1099_v33, %v3687_v1 }
 0x200   : > { %v1122_v51 = vrot.slane %v1100_v10, %v3687_v1  ;;  %v1129_v22 = vrot.slane %v1101_v0, %v3687_v1 }
 0x201   : > { %v1130_v12 = vcombine.low %v1108_v49, %v1115_v56 }
 0x202   : > { %v1131_v8 = vcombine.low %v1122_v51, %v1129_v22 }
 0x203   : > { %v1138_v29 = vrot.slane %v1130_v12, %v3687_v1 }
 0x204   : > { %v1145_v42 = vrot.slane %v1131_v8, %v3687_v1 }
 0x206   : > { %v1146_v3 = vcombine.low %v1138_v29, %v1145_v42 }
 0x208   : > { %1203 = vperm.xlu1 %2658, %v1146_v3  }
 0x212   : > { %v867_v20 = vpop.xlane.xlu1 %866 }
 0x213   : > { %v971_v18 = vrot.slane %v867_v20, %v3663_v28  ;;  %v975_v25 = vrot.slane %v867_v20, %v3666_v60  ;;  %v979_v37 = vrot.slane %v867_v20, %v3669_v23  ;;  %v983_v46 = vrot.slane %v867_v20, %v3672_v39 }
 0x214   : > { %v987_v13 = vrot.slane %v867_v20, %v3675_v17  ;;  %v991_v61 = vrot.slane %v867_v20, %v3678_v5  ;;  %v995_v45 = vrot.slane %v867_v20, %v3681_v40  ;;  %v999_v47 = vrot.slane %v867_v20, %v3684_v24 }
 0x215   : > { %v1147_v43 = vcombine.low %v971_v18, %v975_v25  ;;  %v1148_v2 = vcombine.low %v979_v37, %v983_v46 }
 0x216   : > { %v1827_v41 = vpop.xlane.xlu0 %1826  ;;  %v1149_v16 = vcombine.low %v987_v13, %v991_v61  ;;  %v1150_v50 = vcombine.low %v995_v45, %v999_v47 }
 0x217   : > { %v1157_v54 = vrot.slane %v1147_v43, %v3687_v1  ;;  %v1164_v57 = vrot.slane %v1148_v2, %v3687_v1  ;;  %v1845_v38 = vrot.slane %v1827_v41, %v3663_v28  ;;  %v1849_v26 = vrot.slane %v1827_v41, %v3666_v60 }
 0x218   : > { %v1171_v36 = vrot.slane %v1149_v16, %v3687_v1  ;;  %v1178_v55 = vrot.slane %v1150_v50, %v3687_v1  ;;  %v1853_v53 = vrot.slane %v1827_v41, %v3669_v23  ;;  %v1857_v58 = vrot.slane %v1827_v41, %v3672_v39 }
 0x219   : > { %v1179_v14 = vcombine.low %v1157_v54, %v1164_v57  ;;  %v1861_v6 = vrot.slane %v1827_v41, %v3675_v17  ;;  %v1865_v15 = vrot.slane %v1827_v41, %v3678_v5  ;;  %v1869_v35 = vrot.slane %v1827_v41, %v3681_v40 }
 0x21a   : > { %v1830_v59 = vpop.xlane.xlu1 %1829  ;;  %v1180_v4 = vcombine.low %v1171_v36, %v1178_v55  ;;  %v1873_v7 = vrot.slane %v1827_v41, %v3684_v24  ;;  %v1970_v30 = vcombine.low %v1845_v38, %v1849_v26  ;;  %v1971_v19 = vcombine.low %v1853_v53, %v1857_v58 }
 0x21b   : > { %v1187_v21 = vrot.slane %v1179_v14, %v3687_v1  ;;  %v1972_v27 = vcombine.low %v1861_v6, %v1865_v15  ;;  %v1877_v11 = vrot.slane %v1830_v59, %v3663_v28  ;;  %v1881_v9 = vrot.slane %v1830_v59, %v3666_v60 }
 0x21c   : > { %v1194_v32 = vrot.slane %v1180_v4, %v3687_v1  ;;  %v1973_v52 = vcombine.low %v1869_v35, %v1873_v7  ;;  %v1980_v34 = vrot.slane %v1970_v30, %v3687_v1  ;;  %v1987_v33 = vrot.slane %v1971_v19, %v3687_v1  ;;  %v2222_v4 = vld [vmem:[%s3903_s1 + $0x10] sm:$0xff] }
 0x21d   : > { %v1994_v10 = vrot.slane %v1972_v27, %v3687_v1  ;;  %v1885_v0 = vrot.slane %v1830_v59, %v3669_v23  ;;  %v1889_v49 = vrot.slane %v1830_v59, %v3672_v39  ;;  %v1893_v56 = vrot.slane %v1830_v59, %v3675_v17  ;;  %v2221_v27 = vld [vmem:[%s3903_s1 + $0x8] sm:$0xff] }
 0x21e   : > { %v1195_v51 = vcombine.low %v1187_v21, %v1194_v32  ;;  %v2001_v22 = vrot.slane %v1973_v52, %v3687_v1  ;;  %v2002_v12 = vcombine.low %v1980_v34, %v1987_v33  ;;  %v1897_v8 = vrot.slane %v1830_v59, %v3678_v5  ;;  %v2220_v52 = vld [vmem:[%s3903_s1] sm:$0xff] }
 0x21f   : > { %v1901_v29 = vrot.slane %v1830_v59, %v3681_v40  ;;  %v1905_v42 = vrot.slane %v1830_v59, %v3684_v24  ;;  %v2019_v3 = vcombine.low %v1877_v11, %v1881_v9  ;;  %v2020_v20 = vcombine.low %v1885_v0, %v1889_v49  ;;  %v2223_v59 = vld [vmem:[%s3903_s1 + $0x18] sm:$0xff] }
 0x220   : > { %1206 = vperm.xlu1 %2658, %v1195_v51   ;;  %v2003_v18 = vcombine.low %v1994_v10, %v2001_v22  ;;  %v2010_v25 = vrot.slane %v2002_v12, %v3687_v1  ;;  %v2021_v37 = vcombine.low %v1893_v56, %v1897_v8  ;;  %2571 = vmatpush3.msra.mxu0 %v2223_v59 }
 0x221   : > { %v2022_v46 = vcombine.low %v1901_v29, %v1905_v42  ;;  %v2029_v13 = vrot.slane %v2019_v3, %v3687_v1  ;;  %v2036_v61 = vrot.slane %v2020_v20, %v3687_v1  ;;  %2572 = vmatprep.subr.mxu0 %v2743_v31  ;;  %2582 = vmatpush3.msra.mxu1 %v2223_v59  ;;  %v2745_v20 = vmov -inf  }
 0x222   : > { %v2017_v45 = vrot.slane %v2003_v18, %v3687_v1  ;;  %v2043_v47 = vrot.slane %v2021_v37, %v3687_v1  ;;  %2573 = vmatpush3.msra.mxu0 %v2222_v4  ;;  %2583 = vmatprep.subr.mxu1 %v2743_v31  ;;  %202 = vst.msk [vmem:[#allocation3] sm:$0x1] %vm200_vm9, %v2745_v20 }
 0x223   : > { %v2050_v43 = vrot.slane %v2022_v46, %v3687_v1  ;;  %v2051_v2 = vcombine.low %v2029_v13, %v2036_v61  ;;  %2574 = vmatprep.subr.mxu0 %v2743_v31  ;;  %2584 = vmatpush3.msra.mxu1 %v2222_v4 }
 0x224   : > { %v2018_v41 = vcombine.low %v2010_v25, %v2017_v45  ;;  %2575 = vmatpush3.msra.mxu0 %v2221_v27  ;;  %2585 = vmatprep.subr.mxu1 %v2743_v31  ;;  %v1217_v45 = vadd.s32 4294967280, %v3097_v44 }
 0x225   : > { %v2052_v16 = vcombine.low %v2043_v47, %v2050_v43  ;;  %v2059_v50 = vrot.slane %v2051_v2, %v3687_v1  ;;  %2576 = vmatprep.subr.mxu0 %v2743_v31  ;;  %2586 = vmatpush3.msra.mxu1 %v2221_v27  ;;  %v1224_v43 = vadd.s32 4294967272, %v3097_v44 }
 0x226   : > { %2167 = vperm.xlu1 %2658, %v2018_v41   ;;  %v1833_v54 = vpop.xlane.xlu0 %1832  ;;  %2577 = vmatpush3.msra.mxu0 %v2220_v52  ;;  %v1220_v2 = vsub.s32 %v1217_v45, %v3103_v48 }
 0x227   : > { %v2066_v57 = vrot.slane %v2052_v16, %v3687_v1  ;;  %v1909_v38 = vrot.slane %v1833_v54, %v3663_v28  ;;  %v1913_v26 = vrot.slane %v1833_v54, %v3666_v60  ;;  %v1917_v36 = vrot.slane %v1833_v54, %v3669_v23  ;;  %2587 = vmatprep.subr.mxu1 %v2743_v31 }
 0x228   : > { %v1921_v55 = vrot.slane %v1833_v54, %v3672_v39  ;;  %v1925_v53 = vrot.slane %v1833_v54, %v3675_v17  ;;  %v1929_v58 = vrot.slane %v1833_v54, %v3678_v5  ;;  %v1933_v14 = vrot.slane %v1833_v54, %v3681_v40  ;;  %2592 = vmatprep.subr.mxu0 %v2743_v31 }
 0x229   : > { %v2067_v6 = vcombine.low %v2059_v50, %v2066_v57  ;;  %v1937_v15 = vrot.slane %v1833_v54, %v3684_v24  ;;  %v2068_v35 = vcombine.low %v1909_v38, %v1913_v26  ;;  %2588 = vmatpush3.msra.mxu1 %v2220_v52  ;;  %v1227_v54 = vsub.s32 %v1224_v43, %v3103_v48 }
 0x22a   : > { %v2069_v7 = vcombine.low %v1917_v36, %v1921_v55  ;;  %v2070_v30 = vcombine.low %v1925_v53, %v1929_v58 }
 0x22b   : > { %2170 = vperm.xlu1 %2658, %v2067_v6   ;;  %v2071_v19 = vcombine.low %v1933_v14, %v1937_v15  ;;  %v2078_v21 = vrot.slane %v2068_v35, %v3687_v1  ;;  %v267_v14 = vld [vmem:[#allocation2] sm:$0x1] }
 0x22c   : > { %v2085_v11 = vrot.slane %v2069_v7, %v3687_v1  ;;  %v2092_v9 = vrot.slane %v2070_v30, %v3687_v1 }
 0x22d   : > { %v2099_v32 = vrot.slane %v2071_v19, %v3687_v1 }
 0x22e   : > { %v1836_v34 = vpop.xlane.xlu1 %1835  ;;  %v2100_v33 = vcombine.low %v2078_v21, %v2085_v11 }
 0x22f   : > { %v2101_v10 = vcombine.low %v2092_v9, %v2099_v32  ;;  %v1941_v0 = vrot.slane %v1836_v34, %v3663_v28  ;;  %v1945_v49 = vrot.slane %v1836_v34, %v3666_v60  ;;  %v1949_v56 = vrot.slane %v1836_v34, %v3669_v23 }
 0x230   : > { %v2108_v51 = vrot.slane %v2100_v33, %v3687_v1  ;;  %v1953_v22 = vrot.slane %v1836_v34, %v3672_v39  ;;  %v1957_v12 = vrot.slane %v1836_v34, %v3675_v17  ;;  %v1961_v8 = vrot.slane %v1836_v34, %v3678_v5  ;;  %v1837_v33 = vld [vmem:[#allocation3] sm:$0x1] }
 0x231   : > { %v2115_v29 = vrot.slane %v2101_v10, %v3687_v1  ;;  %v1965_v42 = vrot.slane %v1836_v34, %v3681_v40  ;;  %v1969_v28 = vrot.slane %v1836_v34, %v3684_v24  ;;  %v2117_v60 = vcombine.low %v1941_v0, %v1945_v49 }
 0x232   : > { %v2118_v23 = vcombine.low %v1949_v56, %v1953_v22  ;;  %v2119_v3 = vcombine.low %v1957_v12, %v1961_v8 }
 0x233   : > { %v2116_v39 = vcombine.low %v2108_v51, %v2115_v29  ;;  %v2120_v17 = vcombine.low %v1965_v42, %v1969_v28  ;;  %v2127_v5 = vrot.slane %v2117_v60, %v3687_v1 }
 0x234   : > { %v2134_v40 = vrot.slane %v2118_v23, %v3687_v1  ;;  %v2141_v24 = vrot.slane %v2119_v3, %v3687_v1 }
 0x235   : > { %2173 = vperm.xlu1 %2658, %v2116_v39   ;;  %v2148_v18 = vrot.slane %v2120_v17, %v3687_v1 }
 0x236   : > { %v2149_v25 = vcombine.low %v2127_v5, %v2134_v40 }
 0x237   : > { %v2150_v37 = vcombine.low %v2141_v24, %v2148_v18 }
 0x238   : > { %v2157_v46 = vrot.slane %v2149_v25, %v3687_v1 }
 0x239   : > { %v2164_v13 = vrot.slane %v2150_v37, %v3687_v1 }
 0x23b   : > { %v2165_v61 = vcombine.low %v2157_v46, %v2164_v13 }
 0x23d   : > { %2176 = vperm.xlu1 %2658, %v2165_v61  }
 0x263   : > { %v1198_v16 = vpop.permute.xlu0 %1197 }
 0x264   : > { %v1211_v38 = vrot.slane %v1198_v16, %v3118_v62 }
 0x269   : > { %v1201_v47 = vpop.permute.xlu1 %1200 }
 0x26a   : > { %v1215_v50 = vrot.slane %v1201_v47, %v3121_v63 }
 0x26c   : > { %v1216_v36 = vsel %vm536_vm1, %v1215_v50, %v1211_v38 }
 0x283   : > { %v1204_v41 = vpop.permute.xlu1 %1203 }
 0x284   : > { %v1221_v57 = vrot.slane %v1204_v41, %v1220_v2 }
 0x286   : > { %v1223_v53 = vsel %vm1222_vm11, %v1221_v57, %v1216_v36 }
 0x29b   : > { %v1207_v26 = vpop.permute.xlu1 %1206 }
 0x29c   : > { %v1228_v55 = vrot.slane %v1207_v26, %v1227_v54 }
 0x29e   : > { %v1230_v44 = vsel %vm1229_vm12, %v1228_v55, %v1223_v53 }
 0x29f   : > { %v1237_v58 = vrot.slane %v1230_v44, %v3687_v1 }
 0x2a1   : > { %v1244_v6 = vrot.slane %v1237_v58, %v3687_v1  ;;  %v2168_v48 = vpop.permute.xlu1 %2167 }
 0x2a2   : > { %v2181_v21 = vrot.slane %v2168_v48, %v3118_v62  ;;  %v2374_v62 = vld [vmem:[%s3904_s2] sm:$0x3] }
 0x2a3   : > { %v1246_v15 = vadd.f32 %v1244_v6, %v267_v14 }
 0x2a5   : > { %1248 = vst.msk [vmem:[#allocation2] sm:$0x1] %vm200_vm9, %v1246_v15 }
 0x2a6   : > { %v2171_v4 = vpop.permute.xlu1 %2170 }
 0x2a7   : > { %v2185_v30 = vrot.slane %v2171_v4, %v3121_v63 }
 0x2a9   : > { %v2186_v11 = vsel %vm536_vm1, %v2185_v30, %v2181_v21 }
 0x2ac   : > { %v2217_v35 = vld [vmem:[#allocation2] sm:$0x1] }
 0x2ad   : > { %v2218_v59 = vmul.f32 0.00390625, %v2217_v35 }
 0x2af   : > { %2579 = vmatmul.mubr.msk.f32.vlgmr.msra.gmra.mxu0 %vm2224_vm13, %v2218_v59 }
 0x2b0   : > { %2594 = vmatprep.mubr.msk.f32.mxu0 %vm2744_vm10, %v2743_v31  ;;  %v2174_v7 = vpop.permute.xlu1 %2173  ;;  %2593 = vmatpush3.msk.msra.mxu0 %vm2379_vm14, %v2374_v62 }
 0x2b1   : > { %v2190_v19 = vrot.slane %v2174_v7, %v1220_v2 }
 0x2b3   : > { %v2191_v32 = vsel %vm1222_vm11, %v2190_v19, %v2186_v11 }
 0x2b8   : > { %v2177_v27 = vpop.permute.xlu1 %2176 }
 0x2b9   : > { %v2195_v9 = vrot.slane %v2177_v27, %v1227_v54 }
 0x2bb   : > { %v2196_v52 = vsel %vm1229_vm12, %v2195_v9, %v2191_v32 }
 0x2bc   : > { %v2203_v34 = vrot.slane %v2196_v52, %v3687_v1 }
 0x2be   : > { %v2210_v10 = vrot.slane %v2203_v34, %v3687_v1 }
 0x2c0   : > { %v2212_v31 = vmax.f32 %v1837_v33, %v2210_v10 }
 0x2c2   : > { %2213 = vst.msk [vmem:[#allocation3] sm:$0x1] %vm200_vm9, %v2212_v31 }
 0x2c9   : > { %v2219_v63 = vld [vmem:[#allocation3] sm:$0x1] }
 0x2ca   : > { %2590 = vmatmul.mubr.msk.f32.vlgmr.msra.gmra.mxu1 %vm2224_vm13, %v2219_v63 }
 0x36f   : > { %v2294_v0 = vpop.f32.mrf.mxu0 }
 0x370   : > { %v2298_v51 = vmax.f32 %v2294_v0, 0.0 }
 0x371   : > { %v2580_v49 = vpop.f32.mrf.mxu0 }
 0x38a   : > { %v2368_v56 = vpop.f32.mrf.mxu1 }
 0x38b   : > { %v2372_v22 = vmax.f32 %v2368_v56, 0.0 }
 0x38c   : > { %v2591_v1 = vpop.f32.mrf.mxu1 }
 0x38d   : > { %v2373_v12 = vadd.f32 %v2372_v22, %v2298_v51 }
 0x38f   : > { %2595 = vmatmul.mubr.msk.f32.vlgmr.msra.gmra.mxu0 %vm2375_vm15, %v2373_v12 }
 0x44f   : > { %v2449_v8 = vpop.f32.mrf.mxu0 }
 0x450   : > { %v2553_v29 = vmul.f32 -1.442695, %v2449_v8 }
 0x451   : > { %v2596_v42 = vpop.f32.mrf.mxu0 }
 0x452   : > { %2659 = vpow2.f32 %v2553_v29 }
 0x45f   : > { %v2660_v28 = vpop.eup %2659 }
 0x460   : > { %v2456_v60 = vadd.f32 1.0, %v2660_v28 }
 0x462   : > { %2661 = vrcp.f32 %v2456_v60 }
 0x46f   : > { %v2662_v23 = vpop.eup %2661 }
 0x470   : > { %2459 = vst.msk [vmem:[%s185_s26] sm:$0x1] %vm200_vm9, %v2662_v23 }
 0x471   : > { %2676 = shalt.err (!%p2673_p5)
}
 0x472   : > { %s2677_s8 = scalar_lea.hbm %s3861_s30, 16  ;;  %s2681_s11 = scalar_lea.hbm %s3905_s3, 32 }
 0x473   : > { %p2678_p6 = scmp.ne.s32.totalorder %s3861_s30, %s2677_s8  ;;  %p2682_p10 = scmp.lt.s32.totalorder %s3861_s30, %s3905_s3 }
 0x474   : > { %p2683_p11 = scmp.lt.s32.totalorder %s2681_s11, %s2677_s8 }
 0x475   : > { %p2679_p7 = pnand %p2678_p6, %p2807_p4 }
 0x476   : > { %p2684_p12 = por %p2683_p11, %p2682_p10 }
 0x477   : > { %p2680_p9 = pneg %p2679_p7 }
 0x479   : > { %p2685_p13 = pnand %p2684_p12, %p2680_p9 }
 0x47b   : > { %2688 = shalt.err (!%p2685_p13)
}
 0x47c   : > { %2597 = dma.vmem_to_hbm [thread:$0]  (%p2807_p4), %s2474_s27, 16, %s3861_s30, %s2461_s4  }
 0x47d PF: > { %p2603_p0 = scmp.ge.s32.totalorder %s2739_s17, 2  ;;  %s2485_s21 = sand.u32 1, %s2719_s12  }
 0x47e   : > { %s2486_s23 = scalar_lea.sflag [#allocation5], %s2485_s21 }
 0x47f   : > { %p2600_p1 = pnand %p2603_p0, %p2814_p8 }
 0x481   : > { %p2601_p2 = pneg %p2600_p1 }
 0x483   : > { %2714 = dma.done.wait (%p2601_p2), %s2486_s23, 16  }
 0x484   : > { %2716 = vsyncadd (%p2601_p2), %s2486_s23, 4294967280  ;;  %s16_s17 = sadd.s32 1, %s2739_s17   ;;  %s3908_s12 = smov %s2723_s13 }
 0x485   : > { %p13_p3 = scmp.ge.s32.totalorder %s16_s17, 4   ;;  %s3909_s13 = smov %s2727_s14 }
 0x486   : > { %s3910_s14 = smov %s2820_s25  ;;  %s3911_s15 = smov %s2735_s16 }
 0x487   : > { %s3912_s16 = smov %s3914_s20  ;;  %15 = sbr.rel (!%p13_p3) target bundleno = 4 (0x4), region = 75 }
 0x48c   :  { %2490 = vsyncpa [#allocation5], 1 }
 0x48d   :  { %2492 = vsyncpa [#allocation5 + $0x1], 1 }

</bundles_post_ra>
